<compile_context>
chip_gen: v7x
topology: tpu7x:2x2x1
jax: 0.10.0
libtpu: 0.0.40
codegen_flags: <defaults>
</compile_context>

<pallas_src>
import functools

import jax
import jax.numpy as jnp
from jax.experimental import pallas as pl
from jax.experimental.pallas import tpu as pltpu


def attention_kernel(x_ref, wqkv_ref, wproj_ref, bias_ref, o_ref, *, num_heads):
    N, C = x_ref.shape[1], x_ref.shape[2]
    H = num_heads
    hd = C // H
    cdt = wqkv_ref.dtype                                   # MXU operand dtype

    xb = x_ref[0].astype(cdt)                              # (N, C), lane-dense

    # Fused QKV projection: one full-width MXU matmul, f32 accumulation.
    # Column layout (torch order): [Q_h0..Q_h{H-1} | K_h0.. | V_h0..]; the qk
    # scale is already folded into the Q columns by the wrapper.
    qkv = jnp.dot(xb, wqkv_ref[...],
                  preferred_element_type=jnp.float32)      # (N, 3C) f32
    qkv = qkv.astype(cdt)                                  # single downcast

    outs = []
    for h in range(H):                                     # static unroll over heads
        q_h = qkv[:, h * hd:(h + 1) * hd]                          # (N, hd)
        k_h = qkv[:, C + h * hd:C + (h + 1) * hd]                  # (N, hd)
        v_h = qkv[:, 2 * C + h * hd:2 * C + (h + 1) * hd]          # (N, hd)

        # Scores: q_h @ k_h^T (contract head_dim of both operands).
        s = jax.lax.dot_general(q_h, k_h, (((1,), (1,)), ((), ())),
                                preferred_element_type=jnp.float32)  # (N, N)

        # Softmax in f32; keep probs unnormalized, normalize after AV matmul.
        s = s - jnp.max(s, axis=-1, keepdims=True)
        p = jnp.exp(s)
        inv_l = pl.reciprocal(jnp.sum(p, axis=-1, keepdims=True),
                              approx=True)                          # (N, 1)

        o_h = jnp.dot(p.astype(cdt), v_h,
                      preferred_element_type=jnp.float32)           # (N, hd)
        outs.append(o_h * inv_l)                                    # normalize here

    # Lane-concatenate heads -> (N, C); single full-depth output projection.
    o_all = jnp.concatenate(outs, axis=-1).astype(cdt)              # (N, C)
    y = jnp.dot(o_all, wproj_ref[...],
                preferred_element_type=jnp.float32)                 # (N, C) f32
    o_ref[0] = (y + bias_ref[...]).astype(o_ref.dtype)


def _vmem_cap_bytes():
    """Generation-aware VMEM cap: ~60% of physical VMEM (v7x only has 64 MiB)."""
    try:
        phys = int(pltpu.get_tpu_info().vmem_capacity_bytes)
    except Exception:
        phys = 64 * 1024 * 1024          # assume the smallest (v7x per-core) VMEM
    return max(int(phys * 3 // 5), 8 * 1024 * 1024)


def _vmem_limit_bytes(N, C, H, x_itemsize, out_itemsize, cdt_itemsize):
    """Generous per-step VMEM estimate, clamped to a generation-aware cap."""
    weights = (4 * C * C + C) * cdt_itemsize            # qkv (C,3C) + proj (C,C) + bias
    io = 2 * N * C * (x_itemsize + out_itemsize)        # double-buffered x / out blocks
    qkv = 3 * N * C * (4 + cdt_itemsize)                # f32 accumulate + cdt copy
    scores = min(H, 4) * N * N * (4 + cdt_itemsize)     # a few heads' probs in flight
    assemble = N * C * (2 * 4 + cdt_itemsize)           # per-head outs + projected result
    est = 2 * (2 * weights + io + qkv + scores + assemble)   # 2x headroom
    return int(min(max(est, 8 * 1024 * 1024), _vmem_cap_bytes()))


def attention(x, wqkv, wproj, bproj, *, num_heads, compute_dtype=jnp.bfloat16):
    """x: (B, N, C). wqkv: (C, 3C) (torch weight transposed). wproj: (C, C)
    (torch weight transposed). bproj: (1, C)."""
    B, N, C = x.shape
    H = num_heads
    assert C % H == 0, "dim must be divisible by num_heads"
    hd = C // H
    scale = hd ** (-0.5)

    # Wrapper-side weight plumbing (trace-time, zero kernel cost).
    # Torch qkv columns are already ordered (3, H, hd): fold the scale into Q.
    wqkv_f = wqkv.astype(jnp.float32)
    wqkv_s = jnp.concatenate([wqkv_f[:, :C] * scale, wqkv_f[:, C:]],
                             axis=1).astype(compute_dtype)           # (C, 3C)
    wproj_c = wproj.astype(compute_dtype)                            # (C, C)
    bias = bproj.reshape(1, C).astype(jnp.float32)                   # (1, C)
    x_in = x.astype(compute_dtype)                                   # smaller DMA

    vmem_limit = _vmem_limit_bytes(N, C, H, x_in.dtype.itemsize,
                                   x.dtype.itemsize,
                                   jnp.dtype(compute_dtype).itemsize)

    kernel = functools.partial(attention_kernel, num_heads=H)

    def build(single_buffer_weights):
        def wspec(shape, imap):
            # Weights/bias have a constant block index across the grid ->
            # request single buffering to free VMEM.
            if single_buffer_weights:
                return pl.BlockSpec(shape, imap, pipeline_mode=pl.Buffered(1))
            return pl.BlockSpec(shape, imap)

        return pl.pallas_call(
            kernel,
            out_shape=jax.ShapeDtypeStruct((B, N, C), x.dtype),
            grid=(B,),
            in_specs=[
                pl.BlockSpec((1, N, C), lambda b: (b, 0, 0)),        # x (one batch elt)
                wspec((C, 3 * C), lambda b: (0, 0)),                 # fused qkv weight
                wspec((C, C), lambda b: (0, 0)),                     # proj weight
                wspec((1, C), lambda b: (0, 0)),                     # proj bias
            ],
            out_specs=pl.BlockSpec((1, N, C), lambda b: (b, 0, 0)),
            compiler_params=pltpu.CompilerParams(
                dimension_semantics=("parallel",),
                vmem_limit_bytes=vmem_limit),
        )

    args = (x_in, wqkv_s, wproj_c, bias)
    try:
        return build(True)(*args)
    except Exception:
        # pipeline_mode=pl.Buffered(1) not supported by this JAX/Mosaic build;
        # fall back to default (double-buffered) weight blocks.
        return build(False)(*args)


def attention_reference(x, wqkv, wproj, bproj, *, num_heads):
    """Pure-JAX (f32) replica of the PyTorch forward pass (eval mode)."""
    B, N, C = x.shape
    hd = C // num_heads
    scale = hd ** (-0.5)
    qkv = (x @ wqkv).reshape(B, N, 3, num_heads, hd).transpose(2, 0, 3, 1, 4)
    q, k, v = qkv[0], qkv[1], qkv[2]                                 # (B, H, N, hd)
    attn = (q @ jnp.swapaxes(k, -2, -1)) * scale
    attn = jax.nn.softmax(attn, axis=-1)
    o = (attn @ v).transpose(0, 2, 1, 3).reshape(B, N, C)
    return o @ wproj + bproj[0]


if __name__ == "__main__":
    B, N, C = 2, 8, 32
    num_heads = 8

    key = jax.random.PRNGKey(0)
    kx, kqkv, kproj, kb = jax.random.split(key, 4)

    x = jax.random.normal(kx, (B, N, C), dtype=jnp.float32)
    # nn.Linear(dim, 3*dim, bias=False): torch weight (3C, C); stored transposed.
    wqkv = jax.random.normal(kqkv, (C, 3 * C), dtype=jnp.float32) * 0.05
    # nn.Linear(dim, dim): torch weight (C, C) + bias (C,); stored transposed.
    wproj = jax.random.normal(kproj, (C, C), dtype=jnp.float32) * 0.05
    bproj = jax.random.normal(kb, (1, C), dtype=jnp.float32) * 0.05

    ref = attention_reference(x, wqkv, wproj, bproj, num_heads=num_heads)

    # f32 MXU-operand path (tight tolerance; only approx-reciprocal differs).
    out_f32 = jax.block_until_ready(
        attention(x, wqkv, wproj, bproj, num_heads=num_heads,
                  compute_dtype=jnp.float32))
    assert out_f32.shape == (B, N, C)
    err_f32 = jnp.max(jnp.abs(out_f32 - ref))
    assert jnp.allclose(out_f32, ref, atol=5e-3, rtol=5e-3), f"f32 max abs err {err_f32}"

    # Default bf16 MXU-operand path (f32 accumulation; looser tolerance).
    out_bf16 = jax.block_until_ready(
        attention(x, wqkv, wproj, bproj, num_heads=num_heads))
    assert out_bf16.shape == (B, N, C)
    err_bf16 = jnp.max(jnp.abs(out_bf16.astype(jnp.float32) - ref))
    assert jnp.allclose(out_bf16.astype(jnp.float32), ref, atol=3e-2, rtol=3e-2), (
        f"bf16 max abs err {err_bf16}")

    print("KERNEL_OK")
</pallas_src>

<mosaic_0001>
module attributes {stable_mosaic.version = 11 : i64} {
  func.func @attention_kernel(%arg0: i32, %arg1: memref<1x8x32xf32, #tpu.memory_space<vmem>>, %arg2: memref<32x96xf32, #tpu.memory_space<vmem>>, %arg3: memref<32x32xf32, #tpu.memory_space<vmem>>, %arg4: memref<1x32xf32, #tpu.memory_space<vmem>>, %arg5: memref<1x8x32xf32, #tpu.memory_space<vmem>>) attributes {dimension_semantics = [#tpu.dimension_semantics<parallel>], iteration_bounds = array<i64: 2>, scalar_prefetch = 0 : i64, scratch_operands = 0 : i64, tpu.core_type = #tpu.core_type<tc>, window_params = [{transform_indices = @transform_0, window_bounds = array<i64: 1, 8, 32>}, {pipeline_mode = #tpu.pipeline_mode<synchronous>, transform_indices = @transform_1, window_bounds = array<i64: 32, 96>}, {pipeline_mode = #tpu.pipeline_mode<synchronous>, transform_indices = @transform_2, window_bounds = array<i64: 32, 32>}, {pipeline_mode = #tpu.pipeline_mode<synchronous>, transform_indices = @transform_3, window_bounds = array<i64: 1, 32>}, {transform_indices = @transform_4, window_bounds = array<i64: 1, 8, 32>}]} {
    %c0 = arith.constant 0 : index
    %c0_0 = arith.constant 0 : index
    %c0_1 = arith.constant 0 : index
    %0 = vector.load %arg1[%c0, %c0_0, %c0_1] : memref<1x8x32xf32, #tpu.memory_space<vmem>>, vector<1x8x32xf32>
    %1 = vector.shape_cast %0 : vector<1x8x32xf32> to vector<8x32xf32>
    %c0_2 = arith.constant 0 : index
    %c0_3 = arith.constant 0 : index
    %2 = vector.load %arg2[%c0_2, %c0_3] : memref<32x96xf32, #tpu.memory_space<vmem>>, vector<32x96xf32>
    %cst = arith.constant dense<0.000000e+00> : vector<8x96xf32>
    %3 = tpu.matmul %1, %2, %cst {dimension_numbers = #tpu.dot_dimension_numbers<[1], [0], [0], [1], [0, 0, 1, 1], [], []>} : vector<8x32xf32>, vector<32x96xf32>, vector<8x96xf32> -> vector<8x96xf32>
    %4 = vector.extract_strided_slice %3 {offsets = [0, 0], sizes = [8, 4], strides = [1, 1]} : vector<8x96xf32> to vector<8x4xf32>
    %5 = vector.extract_strided_slice %3 {offsets = [0, 32], sizes = [8, 4], strides = [1, 1]} : vector<8x96xf32> to vector<8x4xf32>
    %6 = vector.extract_strided_slice %3 {offsets = [0, 64], sizes = [8, 4], strides = [1, 1]} : vector<8x96xf32> to vector<8x4xf32>
    %cst_4 = arith.constant dense<0.000000e+00> : vector<8x8xf32>
    %7 = tpu.matmul %4, %5, %cst_4 {dimension_numbers = #tpu.dot_dimension_numbers<[1], [1], [0], [0], [0, 0, 1, 0], [], []>} : vector<8x4xf32>, vector<8x4xf32>, vector<8x8xf32> -> vector<8x8xf32>
    %cst_5 = arith.constant dense<0xFF800000> : vector<8xf32>
    %8 = vector.multi_reduction <maximumf>, %7, %cst_5 [1] : vector<8x8xf32> to vector<8xf32>
    %9 = vector.shape_cast %8 : vector<8xf32> to vector<8x1xf32>
    %10 = vector.broadcast %9 : vector<8x1xf32> to vector<8x8xf32>
    %11 = arith.subf %7, %10 : vector<8x8xf32>
    %12 = math.exp %11 : vector<8x8xf32>
    %cst_6 = arith.constant dense<0.000000e+00> : vector<8xf32>
    %13 = vector.multi_reduction <add>, %12, %cst_6 [1] : vector<8x8xf32> to vector<8xf32>
    %14 = vector.shape_cast %13 : vector<8xf32> to vector<8x1xf32>
    %15 = tpu.reciprocal %14 {approx = true} : vector<8x1xf32> -> vector<8x1xf32>
    %cst_7 = arith.constant dense<0.000000e+00> : vector<8x4xf32>
    %16 = tpu.matmul %12, %6, %cst_7 {dimension_numbers = #tpu.dot_dimension_numbers<[1], [0], [0], [1], [0, 0, 1, 1], [], []>} : vector<8x8xf32>, vector<8x4xf32>, vector<8x4xf32> -> vector<8x4xf32>
    %17 = vector.broadcast %15 : vector<8x1xf32> to vector<8x4xf32>
    %18 = arith.mulf %16, %17 : vector<8x4xf32>
    %19 = vector.extract_strided_slice %3 {offsets = [0, 4], sizes = [8, 4], strides = [1, 1]} : vector<8x96xf32> to vector<8x4xf32>
    %20 = vector.extract_strided_slice %3 {offsets = [0, 36], sizes = [8, 4], strides = [1, 1]} : vector<8x96xf32> to vector<8x4xf32>
    %21 = vector.extract_strided_slice %3 {offsets = [0, 68], sizes = [8, 4], strides = [1, 1]} : vector<8x96xf32> to vector<8x4xf32>
    %cst_8 = arith.constant dense<0.000000e+00> : vector<8x8xf32>
    %22 = tpu.matmul %19, %20, %cst_8 {dimension_numbers = #tpu.dot_dimension_numbers<[1], [1], [0], [0], [0, 0, 1, 0], [], []>} : vector<8x4xf32>, vector<8x4xf32>, vector<8x8xf32> -> vector<8x8xf32>
    %cst_9 = arith.constant dense<0xFF800000> : vector<8xf32>
    %23 = vector.multi_reduction <maximumf>, %22, %cst_9 [1] : vector<8x8xf32> to vector<8xf32>
    %24 = vector.shape_cast %23 : vector<8xf32> to vector<8x1xf32>
    %25 = vector.broadcast %24 : vector<8x1xf32> to vector<8x8xf32>
    %26 = arith.subf %22, %25 : vector<8x8xf32>
    %27 = math.exp %26 : vector<8x8xf32>
    %cst_10 = arith.constant dense<0.000000e+00> : vector<8xf32>
    %28 = vector.multi_reduction <add>, %27, %cst_10 [1] : vector<8x8xf32> to vector<8xf32>
    %29 = vector.shape_cast %28 : vector<8xf32> to vector<8x1xf32>
    %30 = tpu.reciprocal %29 {approx = true} : vector<8x1xf32> -> vector<8x1xf32>
    %cst_11 = arith.constant dense<0.000000e+00> : vector<8x4xf32>
    %31 = tpu.matmul %27, %21, %cst_11 {dimension_numbers = #tpu.dot_dimension_numbers<[1], [0], [0], [1], [0, 0, 1, 1], [], []>} : vector<8x8xf32>, vector<8x4xf32>, vector<8x4xf32> -> vector<8x4xf32>
    %32 = vector.broadcast %30 : vector<8x1xf32> to vector<8x4xf32>
    %33 = arith.mulf %31, %32 : vector<8x4xf32>
    %34 = vector.extract_strided_slice %3 {offsets = [0, 8], sizes = [8, 4], strides = [1, 1]} : vector<8x96xf32> to vector<8x4xf32>
    %35 = vector.extract_strided_slice %3 {offsets = [0, 40], sizes = [8, 4], strides = [1, 1]} : vector<8x96xf32> to vector<8x4xf32>
    %36 = vector.extract_strided_slice %3 {offsets = [0, 72], sizes = [8, 4], strides = [1, 1]} : vector<8x96xf32> to vector<8x4xf32>
    %cst_12 = arith.constant dense<0.000000e+00> : vector<8x8xf32>
    %37 = tpu.matmul %34, %35, %cst_12 {dimension_numbers = #tpu.dot_dimension_numbers<[1], [1], [0], [0], [0, 0, 1, 0], [], []>} : vector<8x4xf32>, vector<8x4xf32>, vector<8x8xf32> -> vector<8x8xf32>
    %cst_13 = arith.constant dense<0xFF800000> : vector<8xf32>
    %38 = vector.multi_reduction <maximumf>, %37, %cst_13 [1] : vector<8x8xf32> to vector<8xf32>
    %39 = vector.shape_cast %38 : vector<8xf32> to vector<8x1xf32>
    %40 = vector.broadcast %39 : vector<8x1xf32> to vector<8x8xf32>
    %41 = arith.subf %37, %40 : vector<8x8xf32>
    %42 = math.exp %41 : vector<8x8xf32>
    %cst_14 = arith.constant dense<0.000000e+00> : vector<8xf32>
    %43 = vector.multi_reduction <add>, %42, %cst_14 [1] : vector<8x8xf32> to vector<8xf32>
    %44 = vector.shape_cast %43 : vector<8xf32> to vector<8x1xf32>
    %45 = tpu.reciprocal %44 {approx = true} : vector<8x1xf32> -> vector<8x1xf32>
    %cst_15 = arith.constant dense<0.000000e+00> : vector<8x4xf32>
    %46 = tpu.matmul %42, %36, %cst_15 {dimension_numbers = #tpu.dot_dimension_numbers<[1], [0], [0], [1], [0, 0, 1, 1], [], []>} : vector<8x8xf32>, vector<8x4xf32>, vector<8x4xf32> -> vector<8x4xf32>
    %47 = vector.broadcast %45 : vector<8x1xf32> to vector<8x4xf32>
    %48 = arith.mulf %46, %47 : vector<8x4xf32>
    %49 = vector.extract_strided_slice %3 {offsets = [0, 12], sizes = [8, 4], strides = [1, 1]} : vector<8x96xf32> to vector<8x4xf32>
    %50 = vector.extract_strided_slice %3 {offsets = [0, 44], sizes = [8, 4], strides = [1, 1]} : vector<8x96xf32> to vector<8x4xf32>
    %51 = vector.extract_strided_slice %3 {offsets = [0, 76], sizes = [8, 4], strides = [1, 1]} : vector<8x96xf32> to vector<8x4xf32>
    %cst_16 = arith.constant dense<0.000000e+00> : vector<8x8xf32>
    %52 = tpu.matmul %49, %50, %cst_16 {dimension_numbers = #tpu.dot_dimension_numbers<[1], [1], [0], [0], [0, 0, 1, 0], [], []>} : vector<8x4xf32>, vector<8x4xf32>, vector<8x8xf32> -> vector<8x8xf32>
    %cst_17 = arith.constant dense<0xFF800000> : vector<8xf32>
    %53 = vector.multi_reduction <maximumf>, %52, %cst_17 [1] : vector<8x8xf32> to vector<8xf32>
    %54 = vector.shape_cast %53 : vector<8xf32> to vector<8x1xf32>
    %55 = vector.broadcast %54 : vector<8x1xf32> to vector<8x8xf32>
    %56 = arith.subf %52, %55 : vector<8x8xf32>
    %57 = math.exp %56 : vector<8x8xf32>
    %cst_18 = arith.constant dense<0.000000e+00> : vector<8xf32>
    %58 = vector.multi_reduction <add>, %57, %cst_18 [1] : vector<8x8xf32> to vector<8xf32>
    %59 = vector.shape_cast %58 : vector<8xf32> to vector<8x1xf32>
    %60 = tpu.reciprocal %59 {approx = true} : vector<8x1xf32> -> vector<8x1xf32>
    %cst_19 = arith.constant dense<0.000000e+00> : vector<8x4xf32>
    %61 = tpu.matmul %57, %51, %cst_19 {dimension_numbers = #tpu.dot_dimension_numbers<[1], [0], [0], [1], [0, 0, 1, 1], [], []>} : vector<8x8xf32>, vector<8x4xf32>, vector<8x4xf32> -> vector<8x4xf32>
    %62 = vector.broadcast %60 : vector<8x1xf32> to vector<8x4xf32>
    %63 = arith.mulf %61, %62 : vector<8x4xf32>
    %64 = vector.extract_strided_slice %3 {offsets = [0, 16], sizes = [8, 4], strides = [1, 1]} : vector<8x96xf32> to vector<8x4xf32>
    %65 = vector.extract_strided_slice %3 {offsets = [0, 48], sizes = [8, 4], strides = [1, 1]} : vector<8x96xf32> to vector<8x4xf32>
    %66 = vector.extract_strided_slice %3 {offsets = [0, 80], sizes = [8, 4], strides = [1, 1]} : vector<8x96xf32> to vector<8x4xf32>
    %cst_20 = arith.constant dense<0.000000e+00> : vector<8x8xf32>
    %67 = tpu.matmul %64, %65, %cst_20 {dimension_numbers = #tpu.dot_dimension_numbers<[1], [1], [0], [0], [0, 0, 1, 0], [], []>} : vector<8x4xf32>, vector<8x4xf32>, vector<8x8xf32> -> vector<8x8xf32>
    %cst_21 = arith.constant dense<0xFF800000> : vector<8xf32>
    %68 = vector.multi_reduction <maximumf>, %67, %cst_21 [1] : vector<8x8xf32> to vector<8xf32>
    %69 = vector.shape_cast %68 : vector<8xf32> to vector<8x1xf32>
    %70 = vector.broadcast %69 : vector<8x1xf32> to vector<8x8xf32>
    %71 = arith.subf %67, %70 : vector<8x8xf32>
    %72 = math.exp %71 : vector<8x8xf32>
    %cst_22 = arith.constant dense<0.000000e+00> : vector<8xf32>
    %73 = vector.multi_reduction <add>, %72, %cst_22 [1] : vector<8x8xf32> to vector<8xf32>
    %74 = vector.shape_cast %73 : vector<8xf32> to vector<8x1xf32>
    %75 = tpu.reciprocal %74 {approx = true} : vector<8x1xf32> -> vector<8x1xf32>
    %cst_23 = arith.constant dense<0.000000e+00> : vector<8x4xf32>
    %76 = tpu.matmul %72, %66, %cst_23 {dimension_numbers = #tpu.dot_dimension_numbers<[1], [0], [0], [1], [0, 0, 1, 1], [], []>} : vector<8x8xf32>, vector<8x4xf32>, vector<8x4xf32> -> vector<8x4xf32>
    %77 = vector.broadcast %75 : vector<8x1xf32> to vector<8x4xf32>
    %78 = arith.mulf %76, %77 : vector<8x4xf32>
    %79 = vector.extract_strided_slice %3 {offsets = [0, 20], sizes = [8, 4], strides = [1, 1]} : vector<8x96xf32> to vector<8x4xf32>
    %80 = vector.extract_strided_slice %3 {offsets = [0, 52], sizes = [8, 4], strides = [1, 1]} : vector<8x96xf32> to vector<8x4xf32>
    %81 = vector.extract_strided_slice %3 {offsets = [0, 84], sizes = [8, 4], strides = [1, 1]} : vector<8x96xf32> to vector<8x4xf32>
    %cst_24 = arith.constant dense<0.000000e+00> : vector<8x8xf32>
    %82 = tpu.matmul %79, %80, %cst_24 {dimension_numbers = #tpu.dot_dimension_numbers<[1], [1], [0], [0], [0, 0, 1, 0], [], []>} : vector<8x4xf32>, vector<8x4xf32>, vector<8x8xf32> -> vector<8x8xf32>
    %cst_25 = arith.constant dense<0xFF800000> : vector<8xf32>
    %83 = vector.multi_reduction <maximumf>, %82, %cst_25 [1] : vector<8x8xf32> to vector<8xf32>
    %84 = vector.shape_cast %83 : vector<8xf32> to vector<8x1xf32>
    %85 = vector.broadcast %84 : vector<8x1xf32> to vector<8x8xf32>
    %86 = arith.subf %82, %85 : vector<8x8xf32>
    %87 = math.exp %86 : vector<8x8xf32>
    %cst_26 = arith.constant dense<0.000000e+00> : vector<8xf32>
    %88 = vector.multi_reduction <add>, %87, %cst_26 [1] : vector<8x8xf32> to vector<8xf32>
    %89 = vector.shape_cast %88 : vector<8xf32> to vector<8x1xf32>
    %90 = tpu.reciprocal %89 {approx = true} : vector<8x1xf32> -> vector<8x1xf32>
    %cst_27 = arith.constant dense<0.000000e+00> : vector<8x4xf32>
    %91 = tpu.matmul %87, %81, %cst_27 {dimension_numbers = #tpu.dot_dimension_numbers<[1], [0], [0], [1], [0, 0, 1, 1], [], []>} : vector<8x8xf32>, vector<8x4xf32>, vector<8x4xf32> -> vector<8x4xf32>
    %92 = vector.broadcast %90 : vector<8x1xf32> to vector<8x4xf32>
    %93 = arith.mulf %91, %92 : vector<8x4xf32>
    %94 = vector.extract_strided_slice %3 {offsets = [0, 24], sizes = [8, 4], strides = [1, 1]} : vector<8x96xf32> to vector<8x4xf32>
    %95 = vector.extract_strided_slice %3 {offsets = [0, 56], sizes = [8, 4], strides = [1, 1]} : vector<8x96xf32> to vector<8x4xf32>
    %96 = vector.extract_strided_slice %3 {offsets = [0, 88], sizes = [8, 4], strides = [1, 1]} : vector<8x96xf32> to vector<8x4xf32>
    %cst_28 = arith.constant dense<0.000000e+00> : vector<8x8xf32>
    %97 = tpu.matmul %94, %95, %cst_28 {dimension_numbers = #tpu.dot_dimension_numbers<[1], [1], [0], [0], [0, 0, 1, 0], [], []>} : vector<8x4xf32>, vector<8x4xf32>, vector<8x8xf32> -> vector<8x8xf32>
    %cst_29 = arith.constant dense<0xFF800000> : vector<8xf32>
    %98 = vector.multi_reduction <maximumf>, %97, %cst_29 [1] : vector<8x8xf32> to vector<8xf32>
    %99 = vector.shape_cast %98 : vector<8xf32> to vector<8x1xf32>
    %100 = vector.broadcast %99 : vector<8x1xf32> to vector<8x8xf32>
    %101 = arith.subf %97, %100 : vector<8x8xf32>
    %102 = math.exp %101 : vector<8x8xf32>
    %cst_30 = arith.constant dense<0.000000e+00> : vector<8xf32>
    %103 = vector.multi_reduction <add>, %102, %cst_30 [1] : vector<8x8xf32> to vector<8xf32>
    %104 = vector.shape_cast %103 : vector<8xf32> to vector<8x1xf32>
    %105 = tpu.reciprocal %104 {approx = true} : vector<8x1xf32> -> vector<8x1xf32>
    %cst_31 = arith.constant dense<0.000000e+00> : vector<8x4xf32>
    %106 = tpu.matmul %102, %96, %cst_31 {dimension_numbers = #tpu.dot_dimension_numbers<[1], [0], [0], [1], [0, 0, 1, 1], [], []>} : vector<8x8xf32>, vector<8x4xf32>, vector<8x4xf32> -> vector<8x4xf32>
    %107 = vector.broadcast %105 : vector<8x1xf32> to vector<8x4xf32>
    %108 = arith.mulf %106, %107 : vector<8x4xf32>
    %109 = vector.extract_strided_slice %3 {offsets = [0, 28], sizes = [8, 4], strides = [1, 1]} : vector<8x96xf32> to vector<8x4xf32>
    %110 = vector.extract_strided_slice %3 {offsets = [0, 60], sizes = [8, 4], strides = [1, 1]} : vector<8x96xf32> to vector<8x4xf32>
    %111 = vector.extract_strided_slice %3 {offsets = [0, 92], sizes = [8, 4], strides = [1, 1]} : vector<8x96xf32> to vector<8x4xf32>
    %cst_32 = arith.constant dense<0.000000e+00> : vector<8x8xf32>
    %112 = tpu.matmul %109, %110, %cst_32 {dimension_numbers = #tpu.dot_dimension_numbers<[1], [1], [0], [0], [0, 0, 1, 0], [], []>} : vector<8x4xf32>, vector<8x4xf32>, vector<8x8xf32> -> vector<8x8xf32>
    %cst_33 = arith.constant dense<0xFF800000> : vector<8xf32>
    %113 = vector.multi_reduction <maximumf>, %112, %cst_33 [1] : vector<8x8xf32> to vector<8xf32>
    %114 = vector.shape_cast %113 : vector<8xf32> to vector<8x1xf32>
    %115 = vector.broadcast %114 : vector<8x1xf32> to vector<8x8xf32>
    %116 = arith.subf %112, %115 : vector<8x8xf32>
    %117 = math.exp %116 : vector<8x8xf32>
    %cst_34 = arith.constant dense<0.000000e+00> : vector<8xf32>
    %118 = vector.multi_reduction <add>, %117, %cst_34 [1] : vector<8x8xf32> to vector<8xf32>
    %119 = vector.shape_cast %118 : vector<8xf32> to vector<8x1xf32>
    %120 = tpu.reciprocal %119 {approx = true} : vector<8x1xf32> -> vector<8x1xf32>
    %cst_35 = arith.constant dense<0.000000e+00> : vector<8x4xf32>
    %121 = tpu.matmul %117, %111, %cst_35 {dimension_numbers = #tpu.dot_dimension_numbers<[1], [0], [0], [1], [0, 0, 1, 1], [], []>} : vector<8x8xf32>, vector<8x4xf32>, vector<8x4xf32> -> vector<8x4xf32>
    %122 = vector.broadcast %120 : vector<8x1xf32> to vector<8x4xf32>
    %123 = arith.mulf %121, %122 : vector<8x4xf32>
    %124 = tpu.concatenate %18, %33, %48, %63, %78, %93, %108, %123 in 1 : vector<8x4xf32>, vector<8x4xf32>, vector<8x4xf32>, vector<8x4xf32>, vector<8x4xf32>, vector<8x4xf32>, vector<8x4xf32>, vector<8x4xf32> -> vector<8x32xf32>
    %c0_36 = arith.constant 0 : index
    %c0_37 = arith.constant 0 : index
    %125 = vector.load %arg3[%c0_36, %c0_37] : memref<32x32xf32, #tpu.memory_space<vmem>>, vector<32x32xf32>
    %cst_38 = arith.constant dense<0.000000e+00> : vector<8x32xf32>
    %126 = tpu.matmul %124, %125, %cst_38 {dimension_numbers = #tpu.dot_dimension_numbers<[1], [0], [0], [1], [0, 0, 1, 1], [], []>} : vector<8x32xf32>, vector<32x32xf32>, vector<8x32xf32> -> vector<8x32xf32>
    %c0_39 = arith.constant 0 : index
    %c0_40 = arith.constant 0 : index
    %127 = vector.load %arg4[%c0_39, %c0_40] : memref<1x32xf32, #tpu.memory_space<vmem>>, vector<1x32xf32>
    %128 = vector.broadcast %127 : vector<1x32xf32> to vector<8x32xf32>
    %129 = arith.addf %126, %128 : vector<8x32xf32>
    %c0_41 = arith.constant 0 : index
    %c0_42 = arith.constant 0 : index
    %c0_43 = arith.constant 0 : index
    %130 = vector.load %arg5[%c0_41, %c0_42, %c0_43] : memref<1x8x32xf32, #tpu.memory_space<vmem>>, vector<1x8x32xf32>
    %131 = vector.shape_cast %130 : vector<1x8x32xf32> to vector<8x32xf32>
    %132 = vector.shape_cast %129 : vector<8x32xf32> to vector<1x8x32xf32>
    tpu.vector_store %arg5[%c0_41, %c0_42, %c0_43], %132 {strides = array<i32>} : memref<1x8x32xf32, #tpu.memory_space<vmem>>, vector<1x8x32xf32>,
    return
  }
  func.func @transform_0(%arg0: i32) -> (i32, i32, i32) {
    %c0_i32 = arith.constant 0 : i32
    %c0_i32_0 = arith.constant 0 : i32
    %c0_i32_1 = arith.constant 0 : i32
    return %arg0, %c0_i32, %c0_i32_0 : i32, i32, i32
  }
  func.func @transform_1(%arg0: i32) -> (i32, i32) {
    %c0_i32 = arith.constant 0 : i32
    %c0_i32_0 = arith.constant 0 : i32
    %c0_i32_1 = arith.constant 0 : i32
    return %c0_i32, %c0_i32_0 : i32, i32
  }
  func.func @transform_2(%arg0: i32) -> (i32, i32) {
    %c0_i32 = arith.constant 0 : i32
    %c0_i32_0 = arith.constant 0 : i32
    %c0_i32_1 = arith.constant 0 : i32
    return %c0_i32, %c0_i32_0 : i32, i32
  }
  func.func @transform_3(%arg0: i32) -> (i32, i32) {
    %c0_i32 = arith.constant 0 : i32
    %c0_i32_0 = arith.constant 0 : i32
    %c0_i32_1 = arith.constant 0 : i32
    return %c0_i32, %c0_i32_0 : i32, i32
  }
  func.func @transform_4(%arg0: i32) -> (i32, i32, i32) {
    %c0_i32 = arith.constant 0 : i32
    %c0_i32_0 = arith.constant 0 : i32
    %c0_i32_1 = arith.constant 0 : i32
    return %arg0, %c0_i32, %c0_i32_0 : i32, i32, i32
  }
}

module attributes {stable_mosaic.version = 11 : i64} {
  func.func @attention_kernel(%arg0: i32, %arg1: memref<1x8x32xf32, #tpu.memory_space<vmem>>, %arg2: memref<32x96xf32, #tpu.memory_space<vmem>>, %arg3: memref<32x32xf32, #tpu.memory_space<vmem>>, %arg4: memref<1x32xf32, #tpu.memory_space<vmem>>, %arg5: memref<1x8x32xf32, #tpu.memory_space<vmem>>) attributes {dimension_semantics = [#tpu.dimension_semantics<parallel>], iteration_bounds = array<i64: 2>, scalar_prefetch = 0 : i64, scratch_operands = 0 : i64, tpu.core_type = #tpu.core_type<tc>, window_params = [{transform_indices = @transform_0, window_bounds = array<i64: 1, 8, 32>}, {pipeline_mode = #tpu.pipeline_mode<synchronous>, transform_indices = @transform_1, window_bounds = array<i64: 32, 96>}, {pipeline_mode = #tpu.pipeline_mode<synchronous>, transform_indices = @transform_2, window_bounds = array<i64: 32, 32>}, {pipeline_mode = #tpu.pipeline_mode<synchronous>, transform_indices = @transform_3, window_bounds = array<i64: 1, 32>}, {transform_indices = @transform_4, window_bounds = array<i64: 1, 8, 32>}]} {
    %c0 = arith.constant 0 : index
    %c0_0 = arith.constant 0 : index
    %c0_1 = arith.constant 0 : index
    %0 = vector.load %arg1[%c0, %c0_0, %c0_1] : memref<1x8x32xf32, #tpu.memory_space<vmem>>, vector<1x8x32xf32>
    %1 = vector.shape_cast %0 : vector<1x8x32xf32> to vector<8x32xf32>
    %c0_2 = arith.constant 0 : index
    %c0_3 = arith.constant 0 : index
    %2 = vector.load %arg2[%c0_2, %c0_3] : memref<32x96xf32, #tpu.memory_space<vmem>>, vector<32x96xf32>
    %cst = arith.constant dense<0.000000e+00> : vector<8x96xf32>
    %3 = tpu.matmul %1, %2, %cst {dimension_numbers = #tpu.dot_dimension_numbers<[1], [0], [0], [1], [0, 0, 1, 1], [], []>} : vector<8x32xf32>, vector<32x96xf32>, vector<8x96xf32> -> vector<8x96xf32>
    %4 = vector.extract_strided_slice %3 {offsets = [0, 0], sizes = [8, 4], strides = [1, 1]} : vector<8x96xf32> to vector<8x4xf32>
    %5 = vector.extract_strided_slice %3 {offsets = [0, 32], sizes = [8, 4], strides = [1, 1]} : vector<8x96xf32> to vector<8x4xf32>
    %6 = vector.extract_strided_slice %3 {offsets = [0, 64], sizes = [8, 4], strides = [1, 1]} : vector<8x96xf32> to vector<8x4xf32>
    %cst_4 = arith.constant dense<0.000000e+00> : vector<8x8xf32>
    %7 = tpu.matmul %4, %5, %cst_4 {dimension_numbers = #tpu.dot_dimension_numbers<[1], [1], [0], [0], [0, 0, 1, 0], [], []>} : vector<8x4xf32>, vector<8x4xf32>, vector<8x8xf32> -> vector<8x8xf32>
    %cst_5 = arith.constant dense<0xFF800000> : vector<8xf32>
    %8 = vector.multi_reduction <maximumf>, %7, %cst_5 [1] : vector<8x8xf32> to vector<8xf32>
    %9 = vector.shape_cast %8 : vector<8xf32> to vector<8x1xf32>
    %10 = vector.broadcast %9 : vector<8x1xf32> to vector<8x8xf32>
    %11 = arith.subf %7, %10 : vector<8x8xf32>
    %12 = math.exp %11 : vector<8x8xf32>
    %cst_6 = arith.constant dense<0.000000e+00> : vector<8xf32>
    %13 = vector.multi_reduction <add>, %12, %cst_6 [1] : vector<8x8xf32> to vector<8xf32>
    %14 = vector.shape_cast %13 : vector<8xf32> to vector<8x1xf32>
    %15 = tpu.reciprocal %14 {approx = true} : vector<8x1xf32> -> vector<8x1xf32>
    %cst_7 = arith.constant dense<0.000000e+00> : vector<8x4xf32>
    %16 = tpu.matmul %12, %6, %cst_7 {dimension_numbers = #tpu.dot_dimension_numbers<[1], [0], [0], [1], [0, 0, 1, 1], [], []>} : vector<8x8xf32>, vector<8x4xf32>, vector<8x4xf32> -> vector<8x4xf32>
    %17 = vector.broadcast %15 : vector<8x1xf32> to vector<8x4xf32>
    %18 = arith.mulf %16, %17 : vector<8x4xf32>
    %19 = vector.extract_strided_slice %3 {offsets = [0, 4], sizes = [8, 4], strides = [1, 1]} : vector<8x96xf32> to vector<8x4xf32>
    %20 = vector.extract_strided_slice %3 {offsets = [0, 36], sizes = [8, 4], strides = [1, 1]} : vector<8x96xf32> to vector<8x4xf32>
    %21 = vector.extract_strided_slice %3 {offsets = [0, 68], sizes = [8, 4], strides = [1, 1]} : vector<8x96xf32> to vector<8x4xf32>
    %cst_8 = arith.constant dense<0.000000e+00> : vector<8x8xf32>
    %22 = tpu.matmul %19, %20, %cst_8 {dimension_numbers = #tpu.dot_dimension_numbers<[1], [1], [0], [0], [0, 0, 1, 0], [], []>} : vector<8x4xf32>, vector<8x4xf32>, vector<8x8xf32> -> vector<8x8xf32>
    %cst_9 = arith.constant dense<0xFF800000> : vector<8xf32>
    %23 = vector.multi_reduction <maximumf>, %22, %cst_9 [1] : vector<8x8xf32> to vector<8xf32>
    %24 = vector.shape_cast %23 : vector<8xf32> to vector<8x1xf32>
    %25 = vector.broadcast %24 : vector<8x1xf32> to vector<8x8xf32>
    %26 = arith.subf %22, %25 : vector<8x8xf32>
    %27 = math.exp %26 : vector<8x8xf32>
    %cst_10 = arith.constant dense<0.000000e+00> : vector<8xf32>
    %28 = vector.multi_reduction <add>, %27, %cst_10 [1] : vector<8x8xf32> to vector<8xf32>
    %29 = vector.shape_cast %28 : vector<8xf32> to vector<8x1xf32>
    %30 = tpu.reciprocal %29 {approx = true} : vector<8x1xf32> -> vector<8x1xf32>
    %cst_11 = arith.constant dense<0.000000e+00> : vector<8x4xf32>
    %31 = tpu.matmul %27, %21, %cst_11 {dimension_numbers = #tpu.dot_dimension_numbers<[1], [0], [0], [1], [0, 0, 1, 1], [], []>} : vector<8x8xf32>, vector<8x4xf32>, vector<8x4xf32> -> vector<8x4xf32>
    %32 = vector.broadcast %30 : vector<8x1xf32> to vector<8x4xf32>
    %33 = arith.mulf %31, %32 : vector<8x4xf32>
    %34 = vector.extract_strided_slice %3 {offsets = [0, 8], sizes = [8, 4], strides = [1, 1]} : vector<8x96xf32> to vector<8x4xf32>
    %35 = vector.extract_strided_slice %3 {offsets = [0, 40], sizes = [8, 4], strides = [1, 1]} : vector<8x96xf32> to vector<8x4xf32>
    %36 = vector.extract_strided_slice %3 {offsets = [0, 72], sizes = [8, 4], strides = [1, 1]} : vector<8x96xf32> to vector<8x4xf32>
    %cst_12 = arith.constant dense<0.000000e+00> : vector<8x8xf32>
    %37 = tpu.matmul %34, %35, %cst_12 {dimension_numbers = #tpu.dot_dimension_numbers<[1], [1], [0], [0], [0, 0, 1, 0], [], []>} : vector<8x4xf32>, vector<8x4xf32>, vector<8x8xf32> -> vector<8x8xf32>
    %cst_13 = arith.constant dense<0xFF800000> : vector<8xf32>
    %38 = vector.multi_reduction <maximumf>, %37, %cst_13 [1] : vector<8x8xf32> to vector<8xf32>
    %39 = vector.shape_cast %38 : vector<8xf32> to vector<8x1xf32>
    %40 = vector.broadcast %39 : vector<8x1xf32> to vector<8x8xf32>
    %41 = arith.subf %37, %40 : vector<8x8xf32>
    %42 = math.exp %41 : vector<8x8xf32>
    %cst_14 = arith.constant dense<0.000000e+00> : vector<8xf32>
    %43 = vector.multi_reduction <add>, %42, %cst_14 [1] : vector<8x8xf32> to vector<8xf32>
    %44 = vector.shape_cast %43 : vector<8xf32> to vector<8x1xf32>
    %45 = tpu.reciprocal %44 {approx = true} : vector<8x1xf32> -> vector<8x1xf32>
    %cst_15 = arith.constant dense<0.000000e+00> : vector<8x4xf32>
    %46 = tpu.matmul %42, %36, %cst_15 {dimension_numbers = #tpu.dot_dimension_numbers<[1], [0], [0], [1], [0, 0, 1, 1], [], []>} : vector<8x8xf32>, vector<8x4xf32>, vector<8x4xf32> -> vector<8x4xf32>
    %47 = vector.broadcast %45 : vector<8x1xf32> to vector<8x4xf32>
    %48 = arith.mulf %46, %47 : vector<8x4xf32>
    %49 = vector.extract_strided_slice %3 {offsets = [0, 12], sizes = [8, 4], strides = [1, 1]} : vector<8x96xf32> to vector<8x4xf32>
    %50 = vector.extract_strided_slice %3 {offsets = [0, 44], sizes = [8, 4], strides = [1, 1]} : vector<8x96xf32> to vector<8x4xf32>
    %51 = vector.extract_strided_slice %3 {offsets = [0, 76], sizes = [8, 4], strides = [1, 1]} : vector<8x96xf32> to vector<8x4xf32>
    %cst_16 = arith.constant dense<0.000000e+00> : vector<8x8xf32>
    %52 = tpu.matmul %49, %50, %cst_16 {dimension_numbers = #tpu.dot_dimension_numbers<[1], [1], [0], [0], [0, 0, 1, 0], [], []>} : vector<8x4xf32>, vector<8x4xf32>, vector<8x8xf32> -> vector<8x8xf32>
    %cst_17 = arith.constant dense<0xFF800000> : vector<8xf32>
    %53 = vector.multi_reduction <maximumf>, %52, %cst_17 [1] : vector<8x8xf32> to vector<8xf32>
    %54 = vector.shape_cast %53 : vector<8xf32> to vector<8x1xf32>
    %55 = vector.broadcast %54 : vector<8x1xf32> to vector<8x8xf32>
    %56 = arith.subf %52, %55 : vector<8x8xf32>
    %57 = math.exp %56 : vector<8x8xf32>
    %cst_18 = arith.constant dense<0.000000e+00> : vector<8xf32>
    %58 = vector.multi_reduction <add>, %57, %cst_18 [1] : vector<8x8xf32> to vector<8xf32>
    %59 = vector.shape_cast %58 : vector<8xf32> to vector<8x1xf32>
    %60 = tpu.reciprocal %59 {approx = true} : vector<8x1xf32> -> vector<8x1xf32>
    %cst_19 = arith.constant dense<0.000000e+00> : vector<8x4xf32>
    %61 = tpu.matmul %57, %51, %cst_19 {dimension_numbers = #tpu.dot_dimension_numbers<[1], [0], [0], [1], [0, 0, 1, 1], [], []>} : vector<8x8xf32>, vector<8x4xf32>, vector<8x4xf32> -> vector<8x4xf32>
    %62 = vector.broadcast %60 : vector<8x1xf32> to vector<8x4xf32>
    %63 = arith.mulf %61, %62 : vector<8x4xf32>
    %64 = vector.extract_strided_slice %3 {offsets = [0, 16], sizes = [8, 4], strides = [1, 1]} : vector<8x96xf32> to vector<8x4xf32>
    %65 = vector.extract_strided_slice %3 {offsets = [0, 48], sizes = [8, 4], strides = [1, 1]} : vector<8x96xf32> to vector<8x4xf32>
    %66 = vector.extract_strided_slice %3 {offsets = [0, 80], sizes = [8, 4], strides = [1, 1]} : vector<8x96xf32> to vector<8x4xf32>
    %cst_20 = arith.constant dense<0.000000e+00> : vector<8x8xf32>
    %67 = tpu.matmul %64, %65, %cst_20 {dimension_numbers = #tpu.dot_dimension_numbers<[1], [1], [0], [0], [0, 0, 1, 0], [], []>} : vector<8x4xf32>, vector<8x4xf32>, vector<8x8xf32> -> vector<8x8xf32>
    %cst_21 = arith.constant dense<0xFF800000> : vector<8xf32>
    %68 = vector.multi_reduction <maximumf>, %67, %cst_21 [1] : vector<8x8xf32> to vector<8xf32>
    %69 = vector.shape_cast %68 : vector<8xf32> to vector<8x1xf32>
    %70 = vector.broadcast %69 : vector<8x1xf32> to vector<8x8xf32>
    %71 = arith.subf %67, %70 : vector<8x8xf32>
    %72 = math.exp %71 : vector<8x8xf32>
    %cst_22 = arith.constant dense<0.000000e+00> : vector<8xf32>
    %73 = vector.multi_reduction <add>, %72, %cst_22 [1] : vector<8x8xf32> to vector<8xf32>
    %74 = vector.shape_cast %73 : vector<8xf32> to vector<8x1xf32>
    %75 = tpu.reciprocal %74 {approx = true} : vector<8x1xf32> -> vector<8x1xf32>
    %cst_23 = arith.constant dense<0.000000e+00> : vector<8x4xf32>
    %76 = tpu.matmul %72, %66, %cst_23 {dimension_numbers = #tpu.dot_dimension_numbers<[1], [0], [0], [1], [0, 0, 1, 1], [], []>} : vector<8x8xf32>, vector<8x4xf32>, vector<8x4xf32> -> vector<8x4xf32>
    %77 = vector.broadcast %75 : vector<8x1xf32> to vector<8x4xf32>
    %78 = arith.mulf %76, %77 : vector<8x4xf32>
    %79 = vector.extract_strided_slice %3 {offsets = [0, 20], sizes = [8, 4], strides = [1, 1]} : vector<8x96xf32> to vector<8x4xf32>
    %80 = vector.extract_strided_slice %3 {offsets = [0, 52], sizes = [8, 4], strides = [1, 1]} : vector<8x96xf32> to vector<8x4xf32>
    %81 = vector.extract_strided_slice %3 {offsets = [0, 84], sizes = [8, 4], strides = [1, 1]} : vector<8x96xf32> to vector<8x4xf32>
    %cst_24 = arith.constant dense<0.000000e+00> : vector<8x8xf32>
    %82 = tpu.matmul %79, %80, %cst_24 {dimension_numbers = #tpu.dot_dimension_numbers<[1], [1], [0], [0], [0, 0, 1, 0], [], []>} : vector<8x4xf32>, vector<8x4xf32>, vector<8x8xf32> -> vector<8x8xf32>
    %cst_25 = arith.constant dense<0xFF800000> : vector<8xf32>
    %83 = vector.multi_reduction <maximumf>, %82, %cst_25 [1] : vector<8x8xf32> to vector<8xf32>
    %84 = vector.shape_cast %83 : vector<8xf32> to vector<8x1xf32>
    %85 = vector.broadcast %84 : vector<8x1xf32> to vector<8x8xf32>
    %86 = arith.subf %82, %85 : vector<8x8xf32>
    %87 = math.exp %86 : vector<8x8xf32>
    %cst_26 = arith.constant dense<0.000000e+00> : vector<8xf32>
    %88 = vector.multi_reduction <add>, %87, %cst_26 [1] : vector<8x8xf32> to vector<8xf32>
    %89 = vector.shape_cast %88 : vector<8xf32> to vector<8x1xf32>
    %90 = tpu.reciprocal %89 {approx = true} : vector<8x1xf32> -> vector<8x1xf32>
    %cst_27 = arith.constant dense<0.000000e+00> : vector<8x4xf32>
    %91 = tpu.matmul %87, %81, %cst_27 {dimension_numbers = #tpu.dot_dimension_numbers<[1], [0], [0], [1], [0, 0, 1, 1], [], []>} : vector<8x8xf32>, vector<8x4xf32>, vector<8x4xf32> -> vector<8x4xf32>
    %92 = vector.broadcast %90 : vector<8x1xf32> to vector<8x4xf32>
    %93 = arith.mulf %91, %92 : vector<8x4xf32>
    %94 = vector.extract_strided_slice %3 {offsets = [0, 24], sizes = [8, 4], strides = [1, 1]} : vector<8x96xf32> to vector<8x4xf32>
    %95 = vector.extract_strided_slice %3 {offsets = [0, 56], sizes = [8, 4], strides = [1, 1]} : vector<8x96xf32> to vector<8x4xf32>
    %96 = vector.extract_strided_slice %3 {offsets = [0, 88], sizes = [8, 4], strides = [1, 1]} : vector<8x96xf32> to vector<8x4xf32>
    %cst_28 = arith.constant dense<0.000000e+00> : vector<8x8xf32>
    %97 = tpu.matmul %94, %95, %cst_28 {dimension_numbers = #tpu.dot_dimension_numbers<[1], [1], [0], [0], [0, 0, 1, 0], [], []>} : vector<8x4xf32>, vector<8x4xf32>, vector<8x8xf32> -> vector<8x8xf32>
    %cst_29 = arith.constant dense<0xFF800000> : vector<8xf32>
    %98 = vector.multi_reduction <maximumf>, %97, %cst_29 [1] : vector<8x8xf32> to vector<8xf32>
    %99 = vector.shape_cast %98 : vector<8xf32> to vector<8x1xf32>
    %100 = vector.broadcast %99 : vector<8x1xf32> to vector<8x8xf32>
    %101 = arith.subf %97, %100 : vector<8x8xf32>
    %102 = math.exp %101 : vector<8x8xf32>
    %cst_30 = arith.constant dense<0.000000e+00> : vector<8xf32>
    %103 = vector.multi_reduction <add>, %102, %cst_30 [1] : vector<8x8xf32> to vector<8xf32>
    %104 = vector.shape_cast %103 : vector<8xf32> to vector<8x1xf32>
    %105 = tpu.reciprocal %104 {approx = true} : vector<8x1xf32> -> vector<8x1xf32>
    %cst_31 = arith.constant dense<0.000000e+00> : vector<8x4xf32>
    %106 = tpu.matmul %102, %96, %cst_31 {dimension_numbers = #tpu.dot_dimension_numbers<[1], [0], [0], [1], [0, 0, 1, 1], [], []>} : vector<8x8xf32>, vector<8x4xf32>, vector<8x4xf32> -> vector<8x4xf32>
    %107 = vector.broadcast %105 : vector<8x1xf32> to vector<8x4xf32>
    %108 = arith.mulf %106, %107 : vector<8x4xf32>
    %109 = vector.extract_strided_slice %3 {offsets = [0, 28], sizes = [8, 4], strides = [1, 1]} : vector<8x96xf32> to vector<8x4xf32>
    %110 = vector.extract_strided_slice %3 {offsets = [0, 60], sizes = [8, 4], strides = [1, 1]} : vector<8x96xf32> to vector<8x4xf32>
    %111 = vector.extract_strided_slice %3 {offsets = [0, 92], sizes = [8, 4], strides = [1, 1]} : vector<8x96xf32> to vector<8x4xf32>
    %cst_32 = arith.constant dense<0.000000e+00> : vector<8x8xf32>
    %112 = tpu.matmul %109, %110, %cst_32 {dimension_numbers = #tpu.dot_dimension_numbers<[1], [1], [0], [0], [0, 0, 1, 0], [], []>} : vector<8x4xf32>, vector<8x4xf32>, vector<8x8xf32> -> vector<8x8xf32>
    %cst_33 = arith.constant dense<0xFF800000> : vector<8xf32>
    %113 = vector.multi_reduction <maximumf>, %112, %cst_33 [1] : vector<8x8xf32> to vector<8xf32>
    %114 = vector.shape_cast %113 : vector<8xf32> to vector<8x1xf32>
    %115 = vector.broadcast %114 : vector<8x1xf32> to vector<8x8xf32>
    %116 = arith.subf %112, %115 : vector<8x8xf32>
    %117 = math.exp %116 : vector<8x8xf32>
    %cst_34 = arith.constant dense<0.000000e+00> : vector<8xf32>
    %118 = vector.multi_reduction <add>, %117, %cst_34 [1] : vector<8x8xf32> to vector<8xf32>
    %119 = vector.shape_cast %118 : vector<8xf32> to vector<8x1xf32>
    %120 = tpu.reciprocal %119 {approx = true} : vector<8x1xf32> -> vector<8x1xf32>
    %cst_35 = arith.constant dense<0.000000e+00> : vector<8x4xf32>
    %121 = tpu.matmul %117, %111, %cst_35 {dimension_numbers = #tpu.dot_dimension_numbers<[1], [0], [0], [1], [0, 0, 1, 1], [], []>} : vector<8x8xf32>, vector<8x4xf32>, vector<8x4xf32> -> vector<8x4xf32>
    %122 = vector.broadcast %120 : vector<8x1xf32> to vector<8x4xf32>
    %123 = arith.mulf %121, %122 : vector<8x4xf32>
    %124 = tpu.concatenate %18, %33, %48, %63, %78, %93, %108, %123 in 1 : vector<8x4xf32>, vector<8x4xf32>, vector<8x4xf32>, vector<8x4xf32>, vector<8x4xf32>, vector<8x4xf32>, vector<8x4xf32>, vector<8x4xf32> -> vector<8x32xf32>
    %c0_36 = arith.constant 0 : index
    %c0_37 = arith.constant 0 : index
    %125 = vector.load %arg3[%c0_36, %c0_37] : memref<32x32xf32, #tpu.memory_space<vmem>>, vector<32x32xf32>
    %cst_38 = arith.constant dense<0.000000e+00> : vector<8x32xf32>
    %126 = tpu.matmul %124, %125, %cst_38 {dimension_numbers = #tpu.dot_dimension_numbers<[1], [0], [0], [1], [0, 0, 1, 1], [], []>} : vector<8x32xf32>, vector<32x32xf32>, vector<8x32xf32> -> vector<8x32xf32>
    %c0_39 = arith.constant 0 : index
    %c0_40 = arith.constant 0 : index
    %127 = vector.load %arg4[%c0_39, %c0_40] : memref<1x32xf32, #tpu.memory_space<vmem>>, vector<1x32xf32>
    %128 = vector.broadcast %127 : vector<1x32xf32> to vector<8x32xf32>
    %129 = arith.addf %126, %128 : vector<8x32xf32>
    %c0_41 = arith.constant 0 : index
    %c0_42 = arith.constant 0 : index
    %c0_43 = arith.constant 0 : index
    %130 = vector.load %arg5[%c0_41, %c0_42, %c0_43] : memref<1x8x32xf32, #tpu.memory_space<vmem>>, vector<1x8x32xf32>
    %131 = vector.shape_cast %130 : vector<1x8x32xf32> to vector<8x32xf32>
    %132 = vector.shape_cast %129 : vector<8x32xf32> to vector<1x8x32xf32>
    tpu.vector_store %arg5[%c0_41, %c0_42, %c0_43], %132 {strides = array<i32>} : memref<1x8x32xf32, #tpu.memory_space<vmem>>, vector<1x8x32xf32>,
    return
  }
  func.func @transform_0(%arg0: i32) -> (i32, i32, i32) {
    %c0_i32 = arith.constant 0 : i32
    %c0_i32_0 = arith.constant 0 : i32
    %c0_i32_1 = arith.constant 0 : i32
    return %arg0, %c0_i32, %c0_i32_0 : i32, i32, i32
  }
  func.func @transform_1(%arg0: i32) -> (i32, i32) {
    %c0_i32 = arith.constant 0 : i32
    %c0_i32_0 = arith.constant 0 : i32
    %c0_i32_1 = arith.constant 0 : i32
    return %c0_i32, %c0_i32_0 : i32, i32
  }
  func.func @transform_2(%arg0: i32) -> (i32, i32) {
    %c0_i32 = arith.constant 0 : i32
    %c0_i32_0 = arith.constant 0 : i32
    %c0_i32_1 = arith.constant 0 : i32
    return %c0_i32, %c0_i32_0 : i32, i32
  }
  func.func @transform_3(%arg0: i32) -> (i32, i32) {
    %c0_i32 = arith.constant 0 : i32
    %c0_i32_0 = arith.constant 0 : i32
    %c0_i32_1 = arith.constant 0 : i32
    return %c0_i32, %c0_i32_0 : i32, i32
  }
  func.func @transform_4(%arg0: i32) -> (i32, i32, i32) {
    %c0_i32 = arith.constant 0 : i32
    %c0_i32_0 = arith.constant 0 : i32
    %c0_i32_1 = arith.constant 0 : i32
    return %arg0, %c0_i32, %c0_i32_0 : i32, i32, i32
  }
}

</mosaic_0001>

<bundles_post_ra>
// kernel: tpu_custom_call.1
= control target key start
LH: loop header
LB: loop body
LE: loop exit
PB: predicated region body
PF: predicated region fallthrough
CT: control target
= control target key end

     0   :  { %9 = vsyncpa [#allocation3], 0  ;;  %s2813_s0 = inlined_call_operand.hbm [shape: f32[2,8,32], index: 0, kind: input, shape index: {}]   ;;  %s2814_s1 = inlined_call_operand.hbm [shape: f32[32,96], index: 1, kind: input, shape index: {}]   ;;  %s2815_s2 = inlined_call_operand.hbm [shape: f32[32,32], index: 2, kind: input, shape index: {}]   ;;  %s2816_s3 = inlined_call_operand.vmem [shape: f32[1,32], index: 3, kind: input, shape index: {}]   ;;  %s2817_s4 = inlined_call_operand.hbm [shape: f32[2,8,32], index: 4, kind: output, shape index: {}]  }
   0x1   :  { %11 = vsyncpa [#allocation3 + $0x1], 0 }
   0x2   :  { %12 = vsyncpa [#allocation6], 0 }
   0x3   :  { %13 = vsyncpa [#allocation4], 0 }
   0x4   :  { %15 = vsyncpa [#allocation4 + $0x1], 0  ;;  %s2425_s15 = smov 0   ;;  %s2427_s16 = smov 0  }
   0x5   :  { %s2429_s17 = smov 0   ;;  %s2431_s18 = smov 0  }
   0x6 LB: > { %s2446_s19 = sadd.s32 4294967295, %s2359_s18   ;;  %s1870_s20 = sadd.s32 4294967294, %s2359_s18   ;;  %s2359_s18 = sphi %s2431_s18, %s2837_s18   ;;  %s2355_s17 = sphi %s2429_s17, %s2836_s17   ;;  %s2351_s16 = sphi %s2427_s16, %s2835_s16   ;;  %s2347_s15 = sphi %s2425_s15, %s2834_s15  }
   0x7   : > { %p41_p0 = scmp.ne.s32.totalorder %s2351_s16, %s2347_s15  ;;  %p2818_p1 = scmp.eq.s32.totalorder %s2446_s19, 0 }
   0x8   : > { %p134_p3 = scmp.eq.s32.totalorder %s1870_s20, 1  ;;  %p1871_p5 = scmp.ge.s32.totalorder %s2359_s18, 1 }
   0x9   : > { %p2455_p4 = por %p2818_p1, %p41_p0  ;;  %p141_p7 = scmp.lt.s32.totalorder %s2359_s18, 3 }
   0xa   : > { %p2460_p6 = por %p134_p3, %p41_p0  ;;  %s2361_s24 = smov [#allocation5]  }
   0xb   : > { %s2821_s21 = scalar_select %p2455_p4, 1, 0 }
   0xc   : > { %s2822_s22 = scalar_select %p2460_p6, 1, 0 }
   0xd   : > { %p2465_p8 = pnand %p1871_p5, %p141_p7  ;;  %s153_s25 = sshll.u32 %s2361_s24, 4  ;;  %s2469_s25 = int_to_ptr.vmem [resolvable:$true] %s153_s25 }
   0xe   : > { %s2362_s27 = smov [#allocation7]   ;;  %s2203_s5 = scalar_lea.hbm %s2814_s1, 512 }
   0xf   : > { %p2081_p9 = pneg %p2465_p8  ;;  %s166_s28 = sshll.u32 %s2362_s27, 4  ;;  %s2480_s28 = int_to_ptr.vmem [resolvable:$true] %s166_s28 }
  0x10   : > { %p2204_p12 = scmp.ne.s32.totalorder %s2814_s1, %s2203_s5  ;;  %p2210_p5 = scmp.lt.u32.totalorder %s2203_s5, %s2814_s1 }
  0x11   : > { %p2476_p11 = pnand %p2081_p9, %p2818_p1 }
  0x13   : > { %p2205_p13 = pneg %p2476_p11 }
  0x15   : > { %p2206_p0 = pnand %p2205_p13, %p2204_p12 }
  0x17   : > { %p2207_p3 = pneg %p2206_p0 }
  0x19   : > { %p2212_p7 = pnand %p2210_p5, %p2207_p3 }
  0x1b   : > { %2215 = shalt.err (!%p2212_p7)
}
  0x1c   : > { %s2216_s10 = scalar_lea.vmem %s2469_s25, 512  ;;  %p2224_p2 = scmp.lt.s32.totalorder %s2469_s25, %s2469_s25 }
  0x1d   : > { %p2217_p9 = scmp.ne.s32.totalorder %s2469_s25, %s2216_s10  ;;  %p2225_p12 = scmp.lt.s32.totalorder %s2216_s10, %s2216_s10 }
  0x1f   : > { %p2219_p10 = pnand %p2217_p9, %p2205_p13  ;;  %p2226_p0 = por %p2225_p12, %p2224_p2 }
  0x21   : > { %p2220_p1 = pneg %p2219_p10 }
  0x23   : > { %p2227_p6 = pnand %p2226_p0, %p2220_p1 }
  0x25   : > { %2230 = shalt.err (!%p2227_p6)
}
  0x26   : > { %s2363_s11 = smov 128   ;;  %s2364_s12 = smov 8  }
  0x27   : > { %2084 = dma.hbm_to_vmem [thread:$0]  (!%p2476_p11), %s2814_s1, 512, %s2469_s25, [#allocation6], %s2363_s11, %s2363_s11, %s2364_s12  }
  0x28   : > { %s2231_s27 = scalar_lea.hbm %s2815_s2, 512 }
  0x29   : > { %p2232_p2 = scmp.ne.s32.totalorder %s2815_s2, %s2231_s27  ;;  %p2238_p10 = scmp.lt.u32.totalorder %s2231_s27, %s2815_s2 }
  0x2b   : > { %p2234_p1 = pnand %p2232_p2, %p2205_p13 }
  0x2d   : > { %p2235_p6 = pneg %p2234_p1 }
  0x2f   : > { %p2240_p3 = pnand %p2238_p10, %p2235_p6 }
  0x31   : > { %2243 = shalt.err (!%p2240_p3)
}
  0x32   : > { %s2244_s25 = scalar_lea.vmem %s2480_s28, 512  ;;  %p2252_p12 = scmp.lt.s32.totalorder %s2480_s28, %s2480_s28 }
  0x33   : > { %p2245_p5 = scmp.ne.s32.totalorder %s2480_s28, %s2244_s25  ;;  %p2253_p0 = scmp.lt.s32.totalorder %s2244_s25, %s2244_s25 }
  0x35   : > { %p2247_p7 = pnand %p2245_p5, %p2205_p13  ;;  %p2254_p2 = por %p2253_p0, %p2252_p12 }
  0x37   : > { %p2248_p9 = pneg %p2247_p7 }
  0x39   : > { %p2255_p1 = pnand %p2254_p2, %p2248_p9 }
  0x3b   : > { %2258 = shalt.err (!%p2255_p1)
}
  0x3c   : > { %2087 = dma.hbm_to_vmem [thread:$0]  (!%p2476_p11), %s2815_s2, 512, %s2480_s28, [#allocation6], %s2363_s11, %s2363_s11, %s2364_s12  }
  0x3d   : > { %s2535_s9 = sadd.s32 1, %s2359_s18   ;;  %s28_s26 = sadd.s32 1, %s2355_s17 }
  0x3e   : > { %s25_s10 = ssub.s32 %s2359_s18, %s2535_s9  ;;  %p35_p13 = scmp.ne.s32.totalorder %s2355_s17, %s2351_s16 }
  0x3f   : > { %p26_p6 = scmp.eq.s32.totalorder %s25_s10, 0  ;;  %p36_p10 = scmp.eq.s32.totalorder %s2359_s18, 0 }
  0x40   : > { %p2825_p3 = scmp.eq.s32.totalorder %s2446_s19, 1  ;;  %p2098_p7 = scmp.lt.s32.totalorder %s2359_s18, 2 }
  0x41   : > { %s2551_s14 = scalar_select %p26_p6, %s2355_s17, %s28_s26  }
  0x42   : > { %p2545_p5 = por %p2825_p3, %p35_p13  ;;  %p37_p9 = por %p36_p10, %p35_p13 }
  0x43   : > { %s183_s20 = sand.u32 1, %s2355_s17   ;;  %s1876_s28 = sshll.u32 %s2359_s18, 7 }
  0x44   : > { %s2826_s13 = scalar_select %p2545_p5, 1, 0 }
  0x45   : > { %s1875_s24 = sshll.u32 %s183_s20, 3  ;;  %s2558_s27 = scalar_lea.hbm %s2813_s0, %s1876_s28 }
  0x46   : > { %s187_s29 = scalar_lea.vmem [#allocation2], %s1875_s24  ;;  %p2562_p11 = pnand %p2098_p7, %p37_p9 }
  0x47   : > { %s194_s30 = sshll.u32 %s187_s29, 4  ;;  %s184_s6 = scalar_lea.sflag [#allocation3], %s183_s20  ;;  %s2560_s30 = int_to_ptr.vmem [resolvable:$true] %s194_s30 }
  0x48   : > { %s2259_s25 = scalar_lea.hbm %s2558_s27, 128  ;;  %p2261_p0 = pneg %p2562_p11 }
  0x49   : > { %p2260_p12 = scmp.ne.s32.totalorder %s2558_s27, %s2259_s25  ;;  %s2264_s26 = scalar_lea.hbm %s2813_s0, 256 }
  0x4a   : > { %p2265_p13 = scmp.lt.u32.totalorder %s2558_s27, %s2813_s0  ;;  %p2266_p6 = scmp.lt.u32.totalorder %s2264_s26, %s2259_s25 }
  0x4b   : > { %p2262_p2 = pnand %p2261_p0, %p2260_p12  ;;  %p2268_p3 = scmp.lt.u32.totalorder %s2259_s25, %s2558_s27 }
  0x4c   : > { %p2267_p10 = por %p2266_p6, %p2265_p13 }
  0x4d   : > { %p2263_p1 = pneg %p2262_p2 }
  0x4e   : > { %p2269_p7 = por %p2268_p3, %p2267_p10 }
  0x50   : > { %p2270_p9 = pnand %p2269_p7, %p2263_p1 }
  0x52   : > { %2273 = shalt.err (!%p2270_p9)
}
  0x53   : > { %s2274_s20 = scalar_lea.vmem %s2560_s30, 128  ;;  %s2365_s28 = smov [#allocation2]  }
  0x54   : > { %p2275_p12 = scmp.ne.s32.totalorder %s2560_s30, %s2274_s20  ;;  %s2279_s11 = sshll.u32 %s2365_s28, 4  ;;  %s2280_s11 = int_to_ptr.vmem [resolvable:$false] %s2279_s11 }
  0x55   : > { %s2281_s12 = scalar_lea.vmem %s2280_s11, 256  ;;  %p2282_p4 = scmp.lt.s32.totalorder %s2560_s30, %s2280_s11 }
  0x56   : > { %p2277_p2 = pnand %p2275_p12, %p2261_p0  ;;  %p2283_p13 = scmp.lt.s32.totalorder %s2281_s12, %s2274_s20 }
  0x58   : > { %p2278_p5 = pneg %p2277_p2  ;;  %p2284_p6 = por %p2283_p13, %p2282_p4 }
  0x5a   : > { %p2285_p10 = pnand %p2284_p6, %p2278_p5 }
  0x5c   : > { %2288 = shalt.err (!%p2285_p10)
}
  0x5d   : > { %2091 = dma.hbm_to_vmem [thread:$0]  (!%p2562_p11), %s2558_s27, 128, %s2560_s30, %s184_s6  }
  0x5e   : > { %203 = sbr.rel (%p2465_p8) target bundleno = 1771 (0x6eb), region = 36  ;;  %s2594_s29 = sand.u32 (!%p2465_p8), 1, %s2351_s16  }
  0x5f   : > { %s1878_s25 = sshll.u32 (!%p2465_p8), %s2594_s29, 3  ;;  %s206_s7 = scalar_lea.sflag (!%p2465_p8), [#allocation3], %s2594_s29 }
  0x60   : > { %s209_s8 = scalar_lea.vmem (!%p2465_p8), [#allocation2], %s1878_s25  ;;  %p2828_p4 = scmp.ne.s32.totalorder (!%p2465_p8), %s2821_s21, 0 }
  0x65   : > { %2334 = dma.done.wait (%p2828_p4), %s206_s7, 128  }
  0x66   : > { %2336 = vsyncadd (%p2828_p4), %s206_s7, 4294967168  ;;  %p2829_p5 = scmp.eq.s32.totalorder %s2446_s19, 0 }
  0x68   : > { %2338 = dma.done.wait (%p2829_p5), [#allocation6], 1024   ;;  %p2830_p8 = pmov %p2829_p5 }
  0x69   : > { %v2366_v0 = vmov 0.0|0.0   ;;  %vm2367_vm0 = vmmov 0   ;;  %v2368_v1 = vmov 0.0   ;;  %v243_v2 = vld [vmem:[#allocation5] sm:$0xff]  ;;  %v244_v3 = vld [vmem:[#allocation5 + $0x8] sm:$0xff]  ;;  %v245_v4 = vld [vmem:[#allocation5 + $0x10] sm:$0xff] }
  0x6a   : > { %2340 = vsyncadd (%p2830_p8), [#allocation6], 4294966272  ;;  %2057 = vmatprep.subr.bf16.mxu0 %v2366_v0  ;;  %1963 = vmatprep.mubr.msk.f32.mxu0 %vm2367_vm0, %v2368_v1  ;;  %v2058_v5 = vpack.c.bf16 %v244_v3, %v243_v2  ;;  %v246_v6 = vld [vmem:[#allocation5 + $0x18] sm:$0xff]  ;;  %vm247_vm1 = vcmask 261120   ;;  %s2369_s21 = smov 64   ;;  %s2370_s23 = smov 96  }
  0x6b   : > { %1966 = vmatprep.subr.mxu1 %v2368_v1  ;;  %1968 = vmatprep.mubr.msk.f32.mxu1 %vm2367_vm0, %v2368_v1  ;;  %v2061_v7 = vpack.c.bf16 %v246_v6, %v245_v4  ;;  %v242_v8 = vld [vmem:[%s209_s8] sm:$0xff]  ;;  %s2371_s27 = smov 92   ;;  %s2372_s30 = smov 124   ;;  %vm324_vm2 = vcmask 31744   ;;  %vm399_vm3 = vcmask 64512   ;;  %vm1672_vm4 = vcmask 97280  }
  0x6c   : > { %2059 = vmatpush3.bf16.msra.mxu0 %v2058_v5  ;;  %s2373_s5 = smov 88   ;;  %s2374_s6 = smov 120   ;;  %vm1674_vm5 = vcmask 130048   ;;  %vm1676_vm6 = vcmask 162816   ;;  %vm1678_vm7 = vcmask 195584   ;;  %vm1680_vm8 = vcmask 228352  }
  0x6d   : > { %2060 = vmatprep.subr.bf16.mxu0 %v2366_v0  ;;  %s2375_s26 = smov 84   ;;  %s2376_s10 = smov 116  }
  0x6e   : > { %s2377_s24 = smov 80   ;;  %s2378_s20 = smov 112  }
  0x6f   : > { %s2379_s28 = smov 108   ;;  %s2380_s11 = smov 72  }
  0x70   : > { %2062 = vmatpush3.bf16.msra.mxu0 %v2061_v7  ;;  %s2381_s12 = smov 104   ;;  %s2382_s7 = smov 68  }
  0x71   : > { %1986 = vmatprep.subr.mxu0 %v2368_v1  ;;  %s2383_s8 = smov 100   ;;  %p2831_p0 = scmp.ne.s32.totalorder %s2826_s13, 0 }
  0x73   : > { %1964 = vmatmul.mubr.msk.f32.vlgmr.msra.gmra.mrb[0].mxu0 %vm247_vm1, %v242_v8 }
  0x74   : > { %1988 = vmatprep.mubr.msk.f32.mxu0 %vm2367_vm0, %v2368_v1 }
 0x146   : > { %v2619_v9 = vpop.f32.mrb[0].mxu0 }
 0x147   : > { %410 = vrot.lane.b32.xlu1 %v2619_v9, %s2369_s21  ;;  %322 = vrot.lane.b32.xlu0 %v2619_v9, %s2370_s23  ;;  %v1965_v10 = vpop.f32.mrb[1].mxu0  ;;  %s2384_s21 = smov 56   ;;  %s2385_s23 = smov 76  }
 0x14b   : > { %489 = vrot.lane.b32.xlu1 %v2619_v9, %s2371_s27  ;;  %s2386_s27 = smov 60  }
 0x14f   : > { %487 = vrot.lane.b32.xlu1 %v2619_v9, %s2372_s30  ;;  %s2387_s30 = smov 44  }
 0x153   : > { %654 = vrot.lane.b32.xlu1 %v2619_v9, %s2373_s5  ;;  %s2388_s5 = smov 52  }
 0x157   : > { %652 = vrot.lane.b32.xlu1 %v2619_v9, %s2374_s6  ;;  %s2389_s6 = smov 36  }
 0x15b   : > { %819 = vrot.lane.b32.xlu1 %v2619_v9, %s2375_s26  ;;  %s2390_s26 = smov 48  }
 0x15f   : > { %817 = vrot.lane.b32.xlu1 %v2619_v9, %s2376_s10  ;;  %s2391_s10 = smov 40  }
 0x163   : > { %984 = vrot.lane.b32.xlu1 %v2619_v9, %s2377_s24  ;;  %s2392_s24 = smov 4  }
 0x167   : > { %982 = vrot.lane.b32.xlu1 %v2619_v9, %s2378_s20  ;;  %s2393_s20 = smov 8  }
 0x16b   : > { %1147 = vrot.lane.b32.xlu1 %v2619_v9, %s2379_s28  ;;  %s2394_s28 = smov 12  }
 0x16f   : > { %1314 = vrot.lane.b32.xlu1 %v2619_v9, %s2380_s11  ;;  %s2395_s11 = smov 16  }
 0x173   : > { %1312 = vrot.lane.b32.xlu1 %v2619_v9, %s2381_s12  ;;  %s2396_s12 = smov 20  }
 0x177   : > { %1479 = vrot.lane.b32.xlu1 %v2619_v9, %s2382_s7  ;;  %s2397_s7 = smov 24  }
 0x17b   : > { %1477 = vrot.lane.b32.xlu1 %v2619_v9, %s2383_s8  ;;  %s2398_s8 = smov 28  }
 0x17f   : > { %740 = vrot.lane.b32.xlu1 %v2619_v9, %s2384_s21 }
 0x1b9   : > { %v411_v11 = vpop.permute.xlu1 %410  ;;  %v323_v12 = vpop.permute.xlu0 %322 }
 0x1ba   : > { %1967 = vmatpush3.xpose.msk.msra.mxu1 %vm324_vm2, %v323_v12 }
 0x1bb   : > { %1971 = vmatprep.subr.mxu1 %v2368_v1 }
 0x1bd   : > { %v2639_v13 = vpop.permute.xlu1 %489  ;;  %1969 = vmatmul.mubr.msk.f32.vlgmr.msra.gmra.mrb[0].mxu1 %vm324_vm2, %v2619_v9 }
 0x1be   : > { %1972 = vmatpush3.msra.mxu1 %v411_v11  ;;  %1973 = vmatprep.mubr.msk.f32.mxu1 %vm2367_vm0, %v2368_v1 }
 0x1bf   : > { %1976 = vmatprep.subr.mxu1 %v2368_v1 }
 0x1c1   : > { %v2646_v14 = vpop.permute.xlu1 %487 }
 0x1c5   : > { %v655_v15 = vpop.permute.xlu1 %654 }
 0x1c6   : > { %1987 = vmatpush3.xpose.msk.msra.mxu0 %vm324_vm2, %v655_v15 }
 0x1c7   : > { %1996 = vmatprep.subr.mxu0 %v2368_v1 }
 0x1c9   : > { %v653_v16 = vpop.permute.xlu1 %652 }
 0x1ca   : > { %1989 = vmatmul.mubr.msk.f32.vlgmr.msra.gmra.mrb[2].mxu0 %vm324_vm2, %v653_v16 }
 0x1cb   : > { %1998 = vmatprep.mubr.msk.f32.mxu0 %vm2367_vm0, %v2368_v1 }
 0x1cd   : > { %v820_v17 = vpop.permute.xlu1 %819 }
 0x1ce   : > { %1997 = vmatpush3.xpose.msk.msra.mxu0 %vm324_vm2, %v820_v17 }
 0x1cf   : > { %2006 = vmatprep.subr.mxu0 %v2368_v1 }
 0x1d1   : > { %v818_v18 = vpop.permute.xlu1 %817 }
 0x1d2   : > { %1999 = vmatmul.mubr.msk.f32.vlgmr.msra.gmra.mrb[4].mxu0 %vm324_vm2, %v818_v18 }
 0x1d3   : > { %2008 = vmatprep.mubr.msk.f32.mxu0 %vm2367_vm0, %v2368_v1 }
 0x1d5   : > { %v985_v19 = vpop.permute.xlu1 %984 }
 0x1d6   : > { %2007 = vmatpush3.xpose.msk.msra.mxu0 %vm324_vm2, %v985_v19 }
 0x1d7   : > { %2016 = vmatprep.subr.mxu0 %v2368_v1 }
 0x1d9   : > { %v983_v20 = vpop.permute.xlu1 %982 }
 0x1da   : > { %2009 = vmatmul.mubr.msk.f32.vlgmr.msra.gmra.mrb[6].mxu0 %vm324_vm2, %v983_v20 }
 0x1db   : > { %2018 = vmatprep.mubr.msk.f32.mxu0 %vm2367_vm0, %v2368_v1 }
 0x1dd   : > { %v1148_v33 = vpop.permute.xlu1 %1147 }
 0x1e1   : > { %v1315_v34 = vpop.permute.xlu1 %1314 }
 0x1e5   : > { %v1313_v37 = vpop.permute.xlu1 %1312 }
 0x1e9   : > { %v1480_v40 = vpop.permute.xlu1 %1479 }
 0x1ed   : > { %v1478_v42 = vpop.permute.xlu1 %1477 }
 0x1f1   : > { %v741_v11 = vpop.permute.xlu1 %740 }
 0x290   : > { %v395_v21 = vpop.f32.mrb[0].mxu1 }
 0x291   : > { %v1970_v22 = vpop.f32.mrb[1].mxu1  ;;  %v400_v23 = vsel %vm399_vm3, %v395_v21, -inf }
 0x292   : > { %401 = vmax.xlane.f32.xlu0 %v400_v23 }
 0x29d   : > { %v2664_v24 = vpop.f32.mrb[2].mxu0 }
 0x29e   : > { %v1990_v25 = vpop.f32.mrb[3].mxu0  ;;  %v730_v30 = vsel %vm399_vm3, %v2664_v24, -inf }
 0x2a5   : > { %v2666_v26 = vpop.f32.mrb[4].mxu0 }
 0x2a6   : > { %v2000_v27 = vpop.f32.mrb[5].mxu0  ;;  %v895_v31 = vsel %vm399_vm3, %v2666_v26, -inf }
 0x2a8   : > { %1149 = vrot.lane.b32.xlu0 %v2619_v9, %s2385_s23 }
 0x2ac   : > { %575 = vrot.lane.b32.xlu0 %v2619_v9, %s2386_s27  ;;  %s1910_s27 = sshll.u32 %s2446_s19, 7 }
 0x2ad   : > { %v2670_v28 = vpop.f32.mrb[6].mxu0 }
 0x2ae   : > { %v2010_v29 = vpop.f32.mrb[7].mxu0  ;;  %v1060_v32 = vsel %vm399_vm3, %v2670_v28, -inf }
 0x2cb   : > { %731 = vmax.xlane.f32.xlu0 %v730_v30 }
 0x2cf   : > { %896 = vmax.xlane.f32.xlu0 %v895_v31 }
 0x2d3   : > { %1061 = vmax.xlane.f32.xlu0 %v1060_v32 }
 0x31f   : > { %v402_v35 = vpop.xlane.xlu0 %401 }
 0x320   : > { %v403_v36 = vsub.f32 %v395_v21, %v402_v35 }
 0x322   : > { %v404_v38 = vmul.f32 1.442695, %v403_v36 }
 0x323   : > { %v1150_v39 = vpop.permute.xlu0 %1149 }
 0x324   : > { %2171 = vpow2.f32 %v404_v38  ;;  %2017 = vmatpush3.xpose.msk.msra.mxu0 %vm324_vm2, %v1150_v39 }
 0x325   : > { %2026 = vmatprep.subr.mxu0 %v2368_v1 }
 0x327   : > { %2019 = vmatmul.mubr.msk.f32.vlgmr.msra.gmra.mrb[8].mxu0 %vm324_vm2, %v1148_v33  ;;  %v576_v43 = vpop.permute.xlu0 %575 }
 0x328   : > { %2027 = vmatpush3.xpose.msk.msra.mxu0 %vm324_vm2, %v1315_v34  ;;  %2028 = vmatprep.mubr.msk.f32.mxu0 %vm2367_vm0, %v2368_v1 }
 0x329   : > { %2036 = vmatprep.subr.mxu0 %v2368_v1 }
 0x32b   : > { %2029 = vmatmul.mubr.msk.f32.vlgmr.msra.gmra.mrb[10].mxu0 %vm324_vm2, %v1313_v37 }
 0x32c   : > { %2037 = vmatpush3.xpose.msk.msra.mxu0 %vm324_vm2, %v1480_v40  ;;  %2038 = vmatprep.mubr.msk.f32.mxu0 %vm2367_vm0, %v2368_v1 }
 0x32d   : > { %2063 = vmatprep.subr.bf16.mxu0 %v2366_v0 }
 0x32e   : > { %v2690_v41 = vpop.eup %2171 }
 0x32f   : > { %1974 = vmatmul.mubr.msk.f32.vlgmr.msra.gmra.mrb[2].mxu1 %vm399_vm3, %v2690_v41  ;;  %2039 = vmatmul.mubr.msk.f32.vlgmr.msra.gmra.mrb[12].mxu0 %vm324_vm2, %v1478_v42 }
 0x330   : > { %1977 = vmatpush3.xpose.msk.msra.mxu1 %vm324_vm2, %v2639_v13  ;;  %1978 = vmatprep.mubr.msk.f32.mxu1 %vm2367_vm0, %v2368_v1 }
 0x331   : > { %1981 = vmatprep.subr.mxu1 %v2368_v1  ;;  %2054 = vmatprep.mubr.msk.f32.mxu0 %vm2367_vm0, %v2368_v1 }
 0x333   : > { %1979 = vmatmul.mubr.msk.f32.vlgmr.msra.gmra.mrb[4].mxu1 %vm324_vm2, %v2646_v14 }
 0x334   : > { %1982 = vmatpush3.msra.mxu1 %v576_v43  ;;  %1983 = vmatprep.mubr.msk.f32.mxu1 %vm2367_vm0, %v2368_v1 }
 0x335   : > { %1991 = vmatprep.subr.mxu1 %v2368_v1 }
 0x358   : > { %v732_v58 = vpop.xlane.xlu0 %731 }
 0x359   : > { %v733_v60 = vsub.f32 %v2664_v24, %v732_v58 }
 0x35b   : > { %v734_v61 = vmul.f32 1.442695, %v733_v60  ;;  %v1685_v60 = vld [vmem:[#allocation7 + $0x18] sm:$0xff] }
 0x35c   : > { %v897_v59 = vpop.xlane.xlu0 %896 }
 0x35d   : > { %v898_v62 = vsub.f32 %v2666_v26, %v897_v59  ;;  %2173 = vpow2.f32 %v734_v61  ;;  %v406_v26 = vsel %vm399_vm3, %v2690_v41, 0.0  ;;  %v1684_v59 = vld [vmem:[#allocation7 + $0x10] sm:$0xff] }
 0x35f   : > { %v899_v2 = vmul.f32 1.442695, %v898_v62  ;;  %v2067_v62 = vpack.c.bf16 %v1685_v60, %v1684_v59 }
 0x360   : > { %v1062_v63 = vpop.xlane.xlu0 %1061 }
 0x361   : > { %v1063_v3 = vsub.f32 %v2670_v28, %v1062_v63  ;;  %2175 = vpow2.f32 %v899_v2 }
 0x363   : > { %v1064_v4 = vmul.f32 1.442695, %v1063_v3 }
 0x365   : > { %2177 = vpow2.f32 %v1064_v4 }
 0x367   : > { %v2174_v5 = vpop.eup %2173 }
 0x368   : > { %v736_v6 = vsel %vm399_vm3, %v2174_v5, 0.0 }
 0x36b   : > { %v2176_v7 = vpop.eup %2175 }
 0x36c   : > { %v901_v8 = vsel %vm399_vm3, %v2176_v7, 0.0 }
 0x3fa   : > { %v1221_v44 = vpop.f32.mrb[8].mxu0 }
 0x3fb   : > { %v2020_v45 = vpop.f32.mrb[9].mxu0  ;;  %v1225_v46 = vsel %vm399_vm3, %v1221_v44, -inf }
 0x3fc   : > { %1226 = vmax.xlane.f32.xlu1 %v1225_v46 }
 0x3fe   : > { %v1386_v47 = vpop.f32.mrb[10].mxu0 }
 0x3ff   : > { %v2030_v48 = vpop.f32.mrb[11].mxu0  ;;  %v1390_v49 = vsel %vm399_vm3, %v1386_v47, -inf }
 0x400   : > { %1391 = vmax.xlane.f32.xlu0 %v1390_v49 }
 0x402   : > { %v2709_v50 = vpop.f32.mrb[2].mxu1  ;;  %v1551_v51 = vpop.f32.mrb[12].mxu0 }
 0x403   : > { %v1975_v52 = vpop.f32.mrb[3].mxu1  ;;  %v2040_v53 = vpop.f32.mrb[13].mxu0  ;;  %v1555_v54 = vsel %vm399_vm3, %v1551_v51, -inf }
 0x404   : > { %1556 = vmax.xlane.f32.xlu1 %v1555_v54  ;;  %v1683_v52 = vld [vmem:[#allocation7 + $0x8] sm:$0xff] }
 0x406   : > { %v561_v55 = vpop.f32.mrb[4].mxu1 }
 0x407   : > { %v1980_v56 = vpop.f32.mrb[5].mxu1  ;;  %v565_v57 = vsel %vm399_vm3, %v561_v55, -inf }
 0x408   : > { %566 = vmax.xlane.f32.xlu1 %v565_v57 }
 0x416   : > { %1235 = vrot.lane.b32.xlu0 %v2619_v9, %s2387_s30  ;;  %s241_s30 = scalar_lea.vmem [#allocation8], %s1878_s25  ;;  %s2399_s25 = smov [#allocation8]  }
 0x419   : > { %905 = vrot.lane.b32.xlu1 %v2619_v9, %s2388_s5  ;;  %s1781_s5 = sshll.u32 %s241_s30, 4  ;;  %s2770_s5 = int_to_ptr.vmem [resolvable:$true] %s1781_s5 }
 0x41a   : > { %1565 = vrot.lane.b32.xlu0 %v2619_v9, %s2389_s6  ;;  %s2289_s19 = scalar_lea.vmem %s2770_s5, 128 }
 0x41b   : > { %p2290_p11 = scmp.ne.s32.totalorder %s2770_s5, %s2289_s19 }
 0x41d   : > { %1070 = vrot.lane.b32.xlu1 %v2619_v9, %s2390_s26  ;;  %p2291_p1 = pnand %p2290_p11, %p2831_p0 }
 0x41f   : > { %p2292_p3 = pneg %p2291_p1 }
 0x421   : > { %1400 = vrot.lane.b32.xlu1 %v2619_v9, %s2391_s10  ;;  %v2178_v9 = vpop.eup %2177  ;;  %s2768_s10 = scalar_lea.hbm %s2817_s4, %s1910_s27 }
 0x422   : > { %v1066_v10 = vsel %vm399_vm3, %v2178_v9, 0.0 }
 0x439   : > { %737 = vadd.xlane.f32.xlu0 %v736_v6 }
 0x43d   : > { %902 = vadd.xlane.f32.xlu0 %v901_v8 }
 0x441   : > { %1067 = vadd.xlane.f32.xlu0 %v1066_v10 }
 0x489   : > { %v1227_v12 = vpop.xlane.xlu1 %1226 }
 0x48a   : > { %v1228_v17 = vsub.f32 %v1221_v44, %v1227_v12 }
 0x48c   : > { %v1229_v20 = vmul.f32 1.442695, %v1228_v17 }
 0x48d   : > { %v1392_v13 = vpop.xlane.xlu0 %1391 }
 0x48e   : > { %v1393_v14 = vsub.f32 %v1386_v47, %v1392_v13 }
 0x490   : > { %v1394_v15 = vmul.f32 1.442695, %v1393_v14 }
 0x491   : > { %v1557_v16 = vpop.xlane.xlu1 %1556  ;;  %v1236_v35 = vpop.permute.xlu0 %1235 }
 0x492   : > { %2179 = vpow2.f32 %v1394_v15  ;;  %v1558_v21 = vsub.f32 %v1551_v51, %v1557_v16  ;;  %v1682_v51 = vld [vmem:[#allocation7] sm:$0xff] }
 0x493   : > { %v2064_v54 = vpack.c.bf16 %v1683_v52, %v1682_v51 }
 0x494   : > { %v1559_v24 = vmul.f32 1.442695, %v1558_v21 }
 0x495   : > { %v567_v18 = vpop.xlane.xlu1 %566  ;;  %v1566_v37 = vpop.permute.xlu0 %1565  ;;  %2065 = vmatpush3.bf16.msra.mxu0 %v2064_v54 }
 0x496   : > { %v568_v19 = vsub.f32 %v561_v55, %v567_v18  ;;  %2066 = vmatprep.subr.bf16.mxu0 %v2366_v0 }
 0x498   : > { %v569_v22 = vmul.f32 1.442695, %v568_v19 }
 0x499   : > { %v906_v30 = vpop.permute.xlu1 %905  ;;  %2068 = vmatpush3.bf16.msra.mxu0 %v2067_v62 }
 0x49a   : > { %2181 = vpow2.f32 %v569_v22 }
 0x49b   : > { %2183 = vpow2.f32 %v1229_v20 }
 0x49c   : > { %v2180_v23 = vpop.eup %2179  ;;  %2185 = vpow2.f32 %v1559_v24 }
 0x49d   : > { %v1396_v25 = vsel %vm399_vm3, %v2180_v23, 0.0  ;;  %v1071_v33 = vpop.permute.xlu1 %1070 }
 0x49e   : > { %1397 = vadd.xlane.f32.xlu0 %v1396_v25 }
 0x4a1   : > { %v1401_v36 = vpop.permute.xlu1 %1400 }
 0x4a2   : > { %407 = vadd.xlane.f32.xlu0 %v406_v26 }
 0x4a4   : > { %v2182_v27 = vpop.eup %2181 }
 0x4a5   : > { %1984 = vmatmul.mubr.msk.f32.vlgmr.msra.gmra.mrb[6].mxu1 %vm399_vm3, %v2182_v27  ;;  %v571_v28 = vsel %vm399_vm3, %v2182_v27, 0.0  ;;  %v2184_v29 = vpop.eup %2183 }
 0x4a6   : > { %1992 = vmatpush3.msra.mxu1 %v741_v11  ;;  %572 = vadd.xlane.f32.xlu1 %v571_v28  ;;  %v1231_v31 = vsel %vm399_vm3, %v2184_v29, 0.0  ;;  %v2186_v32 = vpop.eup %2185 }
 0x4a7   : > { %1993 = vmatprep.mubr.msk.f32.mxu1 %vm2367_vm0, %v2368_v1  ;;  %2001 = vmatprep.subr.mxu1 %v2368_v1  ;;  %v1561_v34 = vsel %vm399_vm3, %v2186_v32, 0.0 }
 0x4a9   : > { %1994 = vmatmul.mubr.msk.f32.vlgmr.msra.gmra.mrb[8].mxu1 %vm399_vm3, %v2174_v5 }
 0x4aa   : > { %2002 = vmatpush3.msra.mxu1 %v906_v30  ;;  %1232 = vadd.xlane.f32.xlu1 %v1231_v31 }
 0x4ab   : > { %2003 = vmatprep.mubr.msk.f32.mxu1 %vm2367_vm0, %v2368_v1  ;;  %2011 = vmatprep.subr.mxu1 %v2368_v1 }
 0x4ad   : > { %2004 = vmatmul.mubr.msk.f32.vlgmr.msra.gmra.mrb[10].mxu1 %vm399_vm3, %v2176_v7 }
 0x4ae   : > { %2012 = vmatpush3.msra.mxu1 %v1071_v33  ;;  %1562 = vadd.xlane.f32.xlu1 %v1561_v34 }
 0x4af   : > { %2013 = vmatprep.mubr.msk.f32.mxu1 %vm2367_vm0, %v2368_v1  ;;  %2021 = vmatprep.subr.mxu1 %v2368_v1 }
 0x4b1   : > { %2014 = vmatmul.mubr.msk.f32.vlgmr.msra.gmra.mrb[12].mxu1 %vm399_vm3, %v2178_v9 }
 0x4b2   : > { %2022 = vmatpush3.msra.mxu1 %v1236_v35  ;;  %2023 = vmatprep.mubr.msk.f32.mxu1 %vm2367_vm0, %v2368_v1 }
 0x4b3   : > { %2031 = vmatprep.subr.mxu1 %v2368_v1 }
 0x4b5   : > { %2024 = vmatmul.mubr.msk.f32.vlgmr.msra.gmra.mrb[14].mxu1 %vm399_vm3, %v2184_v29 }
 0x4b6   : > { %2032 = vmatpush3.msra.mxu1 %v1401_v36  ;;  %2033 = vmatprep.mubr.msk.f32.mxu1 %vm2367_vm0, %v2368_v1 }
 0x4b7   : > { %2041 = vmatprep.subr.mxu1 %v2368_v1 }
 0x4b9   : > { %2034 = vmatmul.mubr.msk.f32.vlgmr.msra.gmra.mrb[16].mxu1 %vm399_vm3, %v2180_v23 }
 0x4ba   : > { %2042 = vmatpush3.msra.mxu1 %v1566_v37  ;;  %2043 = vmatprep.mubr.msk.f32.mxu1 %vm2367_vm0, %v2368_v1 }
 0x4bd   : > { %2044 = vmatmul.mubr.msk.f32.vlgmr.msra.gmra.mrb[18].mxu1 %vm399_vm3, %v2186_v32  ;;  %v1907_v32 = vld [vmem:[%s2816_s3] ss:$0 sm:$0xff] }
 0x4c6   : > { %v738_v38 = vpop.xlane.xlu0 %737 }
 0x4ca   : > { %v903_v40 = vpop.xlane.xlu0 %902 }
 0x4ce   : > { %v1068_v41 = vpop.xlane.xlu0 %1067 }
 0x52b   : > { %v1398_v53 = vpop.xlane.xlu0 %1397 }
 0x52f   : > { %v408_v16 = vpop.xlane.xlu0 %407 }
 0x533   : > { %v573_v39 = vpop.xlane.xlu1 %572 }
 0x534   : > { %2187 = vrcp.f32 %v573_v39 }
 0x535   : > { %2189 = vrcp.f32 %v738_v38 }
 0x536   : > { %2191 = vrcp.f32 %v903_v40 }
 0x537   : > { %2193 = vrcp.f32 %v1068_v41  ;;  %v1233_v46 = vpop.xlane.xlu1 %1232 }
 0x538   : > { %2195 = vrcp.f32 %v1233_v46 }
 0x539   : > { %2197 = vrcp.f32 %v1398_v53 }
 0x53b   : > { %v1563_v61 = vpop.xlane.xlu1 %1562 }
 0x53c   : > { %2199 = vrcp.f32 %v1563_v61 }
 0x53d   : > { %2201 = vrcp.f32 %v408_v16 }
 0x53e   : > { %v2188_v42 = vpop.eup %2187 }
 0x53f   : > { %v2190_v47 = vpop.eup %2189 }
 0x540   : > { %v2192_v55 = vpop.eup %2191 }
 0x541   : > { %v2194_v63 = vpop.eup %2193 }
 0x542   : > { %v2196_v5 = vpop.eup %2195 }
 0x543   : > { %v2198_v0 = vpop.eup %2197 }
 0x546   : > { %v2200_v12 = vpop.eup %2199 }
 0x547   : > { %v2202_v19 = vpop.eup %2201 }
 0x548   : > { %v486_v21 = vmul.f32 %v2202_v19, %v2709_v50 }
 0x578   : > { %v647_v43 = vpop.f32.mrb[6].mxu1 }
 0x579   : > { %v651_v44 = vmul.f32 %v2188_v42, %v647_v43  ;;  %v1985_v45 = vpop.f32.mrb[7].mxu1 }
 0x57b   : > { %1643 = vrot.lane.b32.xlu1 %v651_v44, %s2392_s24  ;;  %s1768_s24 = scalar_lea.sflag [#allocation4], %s2594_s29 }
 0x57c   : > { %v812_v48 = vpop.f32.mrb[8].mxu1 }
 0x57d   : > { %v816_v1 = vmul.f32 %v2190_v47, %v812_v48  ;;  %v1995_v49 = vpop.f32.mrb[9].mxu1 }
 0x57f   : > { %1647 = vrot.lane.b32.xlu0 %v816_v1, %s2393_s20  ;;  %s2293_s20 = sshll.u32 %s2399_s25, 4  ;;  %s2294_s20 = int_to_ptr.vmem [resolvable:$false] %s2293_s20 }
 0x580   : > { %v977_v56 = vpop.f32.mrb[10].mxu1  ;;  %p2296_p7 = scmp.lt.s32.totalorder %s2770_s5, %s2294_s20 }
 0x581   : > { %v981_v57 = vmul.f32 %v2192_v55, %v977_v56  ;;  %v2005_v58 = vpop.f32.mrb[11].mxu1 }
 0x583   : > { %1651 = vrot.lane.b32.xlu1 %v981_v57, %s2394_s28  ;;  %s2295_s28 = scalar_lea.vmem %s2294_s20, 256 }
 0x584   : > { %v1142_v2 = vpop.f32.mrb[12].mxu1  ;;  %p2297_p9 = scmp.lt.s32.totalorder %s2295_s28, %s2289_s19 }
 0x585   : > { %v1146_v3 = vmul.f32 %v2194_v63, %v1142_v2  ;;  %v2015_v4 = vpop.f32.mrb[13].mxu1 }
 0x586   : > { %p2298_p12 = por %p2297_p9, %p2296_p7 }
 0x587   : > { %1655 = vrot.lane.b32.xlu1 %v1146_v3, %s2395_s11 }
 0x588   : > { %v1307_v6 = vpop.f32.mrb[14].mxu1  ;;  %p2299_p2 = pnand %p2298_p12, %p2292_p3 }
 0x589   : > { %v1311_v7 = vmul.f32 %v2196_v5, %v1307_v6  ;;  %v2025_v8 = vpop.f32.mrb[15].mxu1 }
 0x58b   : > { %1659 = vrot.lane.b32.xlu1 %v1311_v7, %s2396_s12 }
 0x58c   : > { %v1472_v9 = vpop.f32.mrb[16].mxu1 }
 0x58d   : > { %v1476_v10 = vmul.f32 %v2198_v0, %v1472_v9  ;;  %v2035_v11 = vpop.f32.mrb[17].mxu1 }
 0x58f   : > { %1663 = vrot.lane.b32.xlu0 %v1476_v10, %s2397_s7 }
 0x590   : > { %v1637_v13 = vpop.f32.mrb[18].mxu1 }
 0x591   : > { %v1641_v14 = vmul.f32 %v2200_v12, %v1637_v13  ;;  %v2045_v15 = vpop.f32.mrb[19].mxu1 }
 0x593   : > { %1667 = vrot.lane.b32.xlu1 %v1641_v14, %s2398_s8 }
 0x5ed   : > { %v1644_v17 = vpop.permute.xlu1 %1643 }
 0x5ee   : > { %v1670_v23 = vsel %vm324_vm2, %v486_v21, %v1644_v17 }
 0x5f1   : > { %v1648_v22 = vpop.permute.xlu0 %1647 }
 0x5f2   : > { %v1671_v24 = vsel %vm399_vm3, %v1670_v23, %v1648_v22 }
 0x5f5   : > { %v1652_v18 = vpop.permute.xlu1 %1651 }
 0x5f6   : > { %v1673_v26 = vsel %vm1672_vm4, %v1671_v24, %v1652_v18 }
 0x5f9   : > { %v1656_v20 = vpop.permute.xlu1 %1655 }
 0x5fa   : > { %v1675_v28 = vsel %vm1674_vm5, %v1673_v26, %v1656_v20 }
 0x5fd   : > { %v1660_v25 = vpop.permute.xlu1 %1659 }
 0x5fe   : > { %v1677_v29 = vsel %vm1676_vm6, %v1675_v28, %v1660_v25 }
 0x601   : > { %v1664_v27 = vpop.permute.xlu0 %1663 }
 0x602   : > { %v1679_v30 = vsel %vm1678_vm7, %v1677_v29, %v1664_v27 }
 0x605   : > { %v1668_v50 = vpop.permute.xlu1 %1667 }
 0x606   : > { %v1681_v31 = vsel %vm1680_vm8, %v1679_v30, %v1668_v50 }
 0x607   : > { %2055 = vmatmul.mubr.msk.f32.vlgmr.msra.gmra.mrb[14].mxu0 %vm247_vm1, %v1681_v31 }
 0x6da   : > { %v1762_v33 = vpop.f32.mrb[14].mxu0 }
 0x6db   : > { %v1763_v34 = vadd.f32 %v1907_v32, %v1762_v33  ;;  %v2056_v35 = vpop.f32.mrb[15].mxu0 }
 0x6dd   : > { %1766 = vst.msk [vmem:[%s241_s30] sm:$0xff] %vm247_vm1, %v1763_v34 }
 0x6de   : > { %2302 = shalt.err (!%p2299_p2)
}
 0x6df   : > { %s2303_s29 = scalar_lea.hbm %s2768_s10, 128  ;;  %s2307_s7 = scalar_lea.hbm %s2817_s4, 256 }
 0x6e0   : > { %p2304_p13 = scmp.ne.s32.totalorder %s2768_s10, %s2303_s29  ;;  %p2308_p4 = scmp.lt.u32.totalorder %s2768_s10, %s2817_s4 }
 0x6e1   : > { %p2309_p5 = scmp.lt.u32.totalorder %s2307_s7, %s2303_s29  ;;  %p2311_p11 = scmp.lt.u32.totalorder %s2303_s29, %s2768_s10 }
 0x6e2   : > { %p2305_p6 = pnand %p2304_p13, %p2831_p0 }
 0x6e3   : > { %p2310_p8 = por %p2309_p5, %p2308_p4 }
 0x6e4   : > { %p2306_p10 = pneg %p2305_p6 }
 0x6e5   : > { %p2312_p1 = por %p2311_p11, %p2310_p8 }
 0x6e7   : > { %p2313_p3 = pnand %p2312_p1, %p2306_p10 }
 0x6e9   : > { %2316 = shalt.err (!%p2313_p3)
}
 0x6ea   : > { %2079 = dma.vmem_to_hbm [thread:$0]  (%p2831_p0), %s2770_s5, 128, %s2768_s10, %s1768_s24  }
 0x6eb PF: > { %s1793_s23 = sand.u32 1, %s2347_s15   ;;  %p2832_p7 = scmp.ne.s32.totalorder %s2822_s22, 0 }
 0x6ec   : > { %p2833_p9 = scmp.ge.s32.totalorder %s2359_s18, 2  ;;  %s1794_s27 = scalar_lea.sflag [#allocation4], %s1793_s23 }
 0x6ee   : > { %p2093_p12 = pnand %p2833_p9, %p2832_p7 }
 0x6f0   : > { %2342 = dma.done.wait (!%p2093_p12), %s1794_s27, 128  }
 0x6f1   : > { %2344 = vsyncadd (!%p2093_p12), %s1794_s27, 4294967168  ;;  %p18_p2 = scmp.ge.s32.totalorder %s2535_s9, 4   ;;  %s2834_s15 = smov %s2351_s16 }
 0x6f2   : > { %s2835_s16 = smov %s2355_s17  ;;  %s2836_s17 = smov %s2551_s14 }
 0x6f3   : > { %s2837_s18 = smov %s2535_s9  ;;  %20 = sbr.rel (!%p18_p2) target bundleno = 6 (0x6), region = 89 }
 0x6fa   :  { %1799 = vsyncpa [#allocation3], 1 }
 0x6fb   :  { %1801 = vsyncpa [#allocation3 + $0x1], 1 }
 0x6fc   :  { %1802 = vsyncpa [#allocation6], 1 }
 0x6fd   :  { %1803 = vsyncpa [#allocation4], 1 }
 0x6fe   :  { %1805 = vsyncpa [#allocation4 + $0x1], 1 }

// kernel: tpu_custom_call.1
= control target key start
LH: loop header
LB: loop body
LE: loop exit
PB: predicated region body
PF: predicated region fallthrough
CT: control target
= control target key end

     0   :  { %9 = vsyncpa [#allocation3], 0  ;;  %s2813_s0 = inlined_call_operand.hbm [shape: f32[2,8,32], index: 0, kind: input, shape index: {}]   ;;  %s2814_s1 = inlined_call_operand.hbm [shape: f32[32,96], index: 1, kind: input, shape index: {}]   ;;  %s2815_s2 = inlined_call_operand.hbm [shape: f32[32,32], index: 2, kind: input, shape index: {}]   ;;  %s2816_s3 = inlined_call_operand.vmem [shape: f32[1,32], index: 3, kind: input, shape index: {}]   ;;  %s2817_s4 = inlined_call_operand.hbm [shape: f32[2,8,32], index: 4, kind: output, shape index: {}]  }
   0x1   :  { %11 = vsyncpa [#allocation3 + $0x1], 0 }
   0x2   :  { %12 = vsyncpa [#allocation6], 0 }
   0x3   :  { %13 = vsyncpa [#allocation4], 0 }
   0x4   :  { %15 = vsyncpa [#allocation4 + $0x1], 0  ;;  %s2425_s15 = smov 0   ;;  %s2427_s16 = smov 0  }
   0x5   :  { %s2429_s17 = smov 0   ;;  %s2431_s18 = smov 0  }
   0x6 LB: > { %s2446_s19 = sadd.s32 4294967295, %s2359_s18   ;;  %s1870_s20 = sadd.s32 4294967294, %s2359_s18   ;;  %s2359_s18 = sphi %s2431_s18, %s2837_s18   ;;  %s2355_s17 = sphi %s2429_s17, %s2836_s17   ;;  %s2351_s16 = sphi %s2427_s16, %s2835_s16   ;;  %s2347_s15 = sphi %s2425_s15, %s2834_s15  }
   0x7   : > { %p41_p0 = scmp.ne.s32.totalorder %s2351_s16, %s2347_s15  ;;  %p2818_p1 = scmp.eq.s32.totalorder %s2446_s19, 0 }
   0x8   : > { %p134_p3 = scmp.eq.s32.totalorder %s1870_s20, 1  ;;  %p1871_p5 = scmp.ge.s32.totalorder %s2359_s18, 1 }
   0x9   : > { %p2455_p4 = por %p2818_p1, %p41_p0  ;;  %p141_p7 = scmp.lt.s32.totalorder %s2359_s18, 3 }
   0xa   : > { %p2460_p6 = por %p134_p3, %p41_p0  ;;  %s2361_s24 = smov [#allocation5]  }
   0xb   : > { %s2821_s21 = scalar_select %p2455_p4, 1, 0 }
   0xc   : > { %s2822_s22 = scalar_select %p2460_p6, 1, 0 }
   0xd   : > { %p2465_p8 = pnand %p1871_p5, %p141_p7  ;;  %s153_s25 = sshll.u32 %s2361_s24, 4  ;;  %s2469_s25 = int_to_ptr.vmem [resolvable:$true] %s153_s25 }
   0xe   : > { %s2362_s27 = smov [#allocation7]   ;;  %s2203_s5 = scalar_lea.hbm %s2814_s1, 512 }
   0xf   : > { %p2081_p9 = pneg %p2465_p8  ;;  %s166_s28 = sshll.u32 %s2362_s27, 4  ;;  %s2480_s28 = int_to_ptr.vmem [resolvable:$true] %s166_s28 }
  0x10   : > { %p2204_p12 = scmp.ne.s32.totalorder %s2814_s1, %s2203_s5  ;;  %p2210_p5 = scmp.lt.u32.totalorder %s2203_s5, %s2814_s1 }
  0x11   : > { %p2476_p11 = pnand %p2081_p9, %p2818_p1 }
  0x13   : > { %p2205_p13 = pneg %p2476_p11 }
  0x15   : > { %p2206_p0 = pnand %p2205_p13, %p2204_p12 }
  0x17   : > { %p2207_p3 = pneg %p2206_p0 }
  0x19   : > { %p2212_p7 = pnand %p2210_p5, %p2207_p3 }
  0x1b   : > { %2215 = shalt.err (!%p2212_p7)
}
  0x1c   : > { %s2216_s10 = scalar_lea.vmem %s2469_s25, 512  ;;  %p2224_p2 = scmp.lt.s32.totalorder %s2469_s25, %s2469_s25 }
  0x1d   : > { %p2217_p9 = scmp.ne.s32.totalorder %s2469_s25, %s2216_s10  ;;  %p2225_p12 = scmp.lt.s32.totalorder %s2216_s10, %s2216_s10 }
  0x1f   : > { %p2219_p10 = pnand %p2217_p9, %p2205_p13  ;;  %p2226_p0 = por %p2225_p12, %p2224_p2 }
  0x21   : > { %p2220_p1 = pneg %p2219_p10 }
  0x23   : > { %p2227_p6 = pnand %p2226_p0, %p2220_p1 }
  0x25   : > { %2230 = shalt.err (!%p2227_p6)
}
  0x26   : > { %s2363_s11 = smov 128   ;;  %s2364_s12 = smov 8  }
  0x27   : > { %2084 = dma.hbm_to_vmem [thread:$0]  (!%p2476_p11), %s2814_s1, 512, %s2469_s25, [#allocation6], %s2363_s11, %s2363_s11, %s2364_s12  }
  0x28   : > { %s2231_s27 = scalar_lea.hbm %s2815_s2, 512 }
  0x29   : > { %p2232_p2 = scmp.ne.s32.totalorder %s2815_s2, %s2231_s27  ;;  %p2238_p10 = scmp.lt.u32.totalorder %s2231_s27, %s2815_s2 }
  0x2b   : > { %p2234_p1 = pnand %p2232_p2, %p2205_p13 }
  0x2d   : > { %p2235_p6 = pneg %p2234_p1 }
  0x2f   : > { %p2240_p3 = pnand %p2238_p10, %p2235_p6 }
  0x31   : > { %2243 = shalt.err (!%p2240_p3)
}
  0x32   : > { %s2244_s25 = scalar_lea.vmem %s2480_s28, 512  ;;  %p2252_p12 = scmp.lt.s32.totalorder %s2480_s28, %s2480_s28 }
  0x33   : > { %p2245_p5 = scmp.ne.s32.totalorder %s2480_s28, %s2244_s25  ;;  %p2253_p0 = scmp.lt.s32.totalorder %s2244_s25, %s2244_s25 }
  0x35   : > { %p2247_p7 = pnand %p2245_p5, %p2205_p13  ;;  %p2254_p2 = por %p2253_p0, %p2252_p12 }
  0x37   : > { %p2248_p9 = pneg %p2247_p7 }
  0x39   : > { %p2255_p1 = pnand %p2254_p2, %p2248_p9 }
  0x3b   : > { %2258 = shalt.err (!%p2255_p1)
}
  0x3c   : > { %2087 = dma.hbm_to_vmem [thread:$0]  (!%p2476_p11), %s2815_s2, 512, %s2480_s28, [#allocation6], %s2363_s11, %s2363_s11, %s2364_s12  }
  0x3d   : > { %s2535_s9 = sadd.s32 1, %s2359_s18   ;;  %s28_s26 = sadd.s32 1, %s2355_s17 }
  0x3e   : > { %s25_s10 = ssub.s32 %s2359_s18, %s2535_s9  ;;  %p35_p13 = scmp.ne.s32.totalorder %s2355_s17, %s2351_s16 }
  0x3f   : > { %p26_p6 = scmp.eq.s32.totalorder %s25_s10, 0  ;;  %p36_p10 = scmp.eq.s32.totalorder %s2359_s18, 0 }
  0x40   : > { %p2825_p3 = scmp.eq.s32.totalorder %s2446_s19, 1  ;;  %p2098_p7 = scmp.lt.s32.totalorder %s2359_s18, 2 }
  0x41   : > { %s2551_s14 = scalar_select %p26_p6, %s2355_s17, %s28_s26  }
  0x42   : > { %p2545_p5 = por %p2825_p3, %p35_p13  ;;  %p37_p9 = por %p36_p10, %p35_p13 }
  0x43   : > { %s183_s20 = sand.u32 1, %s2355_s17   ;;  %s1876_s28 = sshll.u32 %s2359_s18, 7 }
  0x44   : > { %s2826_s13 = scalar_select %p2545_p5, 1, 0 }
  0x45   : > { %s1875_s24 = sshll.u32 %s183_s20, 3  ;;  %s2558_s27 = scalar_lea.hbm %s2813_s0, %s1876_s28 }
  0x46   : > { %s187_s29 = scalar_lea.vmem [#allocation2], %s1875_s24  ;;  %p2562_p11 = pnand %p2098_p7, %p37_p9 }
  0x47   : > { %s194_s30 = sshll.u32 %s187_s29, 4  ;;  %s184_s6 = scalar_lea.sflag [#allocation3], %s183_s20  ;;  %s2560_s30 = int_to_ptr.vmem [resolvable:$true] %s194_s30 }
  0x48   : > { %s2259_s25 = scalar_lea.hbm %s2558_s27, 128  ;;  %p2261_p0 = pneg %p2562_p11 }
  0x49   : > { %p2260_p12 = scmp.ne.s32.totalorder %s2558_s27, %s2259_s25  ;;  %s2264_s26 = scalar_lea.hbm %s2813_s0, 256 }
  0x4a   : > { %p2265_p13 = scmp.lt.u32.totalorder %s2558_s27, %s2813_s0  ;;  %p2266_p6 = scmp.lt.u32.totalorder %s2264_s26, %s2259_s25 }
  0x4b   : > { %p2262_p2 = pnand %p2261_p0, %p2260_p12  ;;  %p2268_p3 = scmp.lt.u32.totalorder %s2259_s25, %s2558_s27 }
  0x4c   : > { %p2267_p10 = por %p2266_p6, %p2265_p13 }
  0x4d   : > { %p2263_p1 = pneg %p2262_p2 }
  0x4e   : > { %p2269_p7 = por %p2268_p3, %p2267_p10 }
  0x50   : > { %p2270_p9 = pnand %p2269_p7, %p2263_p1 }
  0x52   : > { %2273 = shalt.err (!%p2270_p9)
}
  0x53   : > { %s2274_s20 = scalar_lea.vmem %s2560_s30, 128  ;;  %s2365_s28 = smov [#allocation2]  }
  0x54   : > { %p2275_p12 = scmp.ne.s32.totalorder %s2560_s30, %s2274_s20  ;;  %s2279_s11 = sshll.u32 %s2365_s28, 4  ;;  %s2280_s11 = int_to_ptr.vmem [resolvable:$false] %s2279_s11 }
  0x55   : > { %s2281_s12 = scalar_lea.vmem %s2280_s11, 256  ;;  %p2282_p4 = scmp.lt.s32.totalorder %s2560_s30, %s2280_s11 }
  0x56   : > { %p2277_p2 = pnand %p2275_p12, %p2261_p0  ;;  %p2283_p13 = scmp.lt.s32.totalorder %s2281_s12, %s2274_s20 }
  0x58   : > { %p2278_p5 = pneg %p2277_p2  ;;  %p2284_p6 = por %p2283_p13, %p2282_p4 }
  0x5a   : > { %p2285_p10 = pnand %p2284_p6, %p2278_p5 }
  0x5c   : > { %2288 = shalt.err (!%p2285_p10)
}
  0x5d   : > { %2091 = dma.hbm_to_vmem [thread:$0]  (!%p2562_p11), %s2558_s27, 128, %s2560_s30, %s184_s6  }
  0x5e   : > { %203 = sbr.rel (%p2465_p8) target bundleno = 1771 (0x6eb), region = 36  ;;  %s2594_s29 = sand.u32 (!%p2465_p8), 1, %s2351_s16  }
  0x5f   : > { %s1878_s25 = sshll.u32 (!%p2465_p8), %s2594_s29, 3  ;;  %s206_s7 = scalar_lea.sflag (!%p2465_p8), [#allocation3], %s2594_s29 }
  0x60   : > { %s209_s8 = scalar_lea.vmem (!%p2465_p8), [#allocation2], %s1878_s25  ;;  %p2828_p4 = scmp.ne.s32.totalorder (!%p2465_p8), %s2821_s21, 0 }
  0x65   : > { %2334 = dma.done.wait (%p2828_p4), %s206_s7, 128  }
  0x66   : > { %2336 = vsyncadd (%p2828_p4), %s206_s7, 4294967168  ;;  %p2829_p5 = scmp.eq.s32.totalorder %s2446_s19, 0 }
  0x68   : > { %2338 = dma.done.wait (%p2829_p5), [#allocation6], 1024   ;;  %p2830_p8 = pmov %p2829_p5 }
  0x69   : > { %v2366_v0 = vmov 0.0|0.0   ;;  %vm2367_vm0 = vmmov 0   ;;  %v2368_v1 = vmov 0.0   ;;  %v243_v2 = vld [vmem:[#allocation5] sm:$0xff]  ;;  %v244_v3 = vld [vmem:[#allocation5 + $0x8] sm:$0xff]  ;;  %v245_v4 = vld [vmem:[#allocation5 + $0x10] sm:$0xff] }
  0x6a   : > { %2340 = vsyncadd (%p2830_p8), [#allocation6], 4294966272  ;;  %2057 = vmatprep.subr.bf16.mxu0 %v2366_v0  ;;  %1963 = vmatprep.mubr.msk.f32.mxu0 %vm2367_vm0, %v2368_v1  ;;  %v2058_v5 = vpack.c.bf16 %v244_v3, %v243_v2  ;;  %v246_v6 = vld [vmem:[#allocation5 + $0x18] sm:$0xff]  ;;  %vm247_vm1 = vcmask 261120   ;;  %s2369_s21 = smov 64   ;;  %s2370_s23 = smov 96  }
  0x6b   : > { %1966 = vmatprep.subr.mxu1 %v2368_v1  ;;  %1968 = vmatprep.mubr.msk.f32.mxu1 %vm2367_vm0, %v2368_v1  ;;  %v2061_v7 = vpack.c.bf16 %v246_v6, %v245_v4  ;;  %v242_v8 = vld [vmem:[%s209_s8] sm:$0xff]  ;;  %s2371_s27 = smov 92   ;;  %s2372_s30 = smov 124   ;;  %vm324_vm2 = vcmask 31744   ;;  %vm399_vm3 = vcmask 64512   ;;  %vm1672_vm4 = vcmask 97280  }
  0x6c   : > { %2059 = vmatpush3.bf16.msra.mxu0 %v2058_v5  ;;  %s2373_s5 = smov 88   ;;  %s2374_s6 = smov 120   ;;  %vm1674_vm5 = vcmask 130048   ;;  %vm1676_vm6 = vcmask 162816   ;;  %vm1678_vm7 = vcmask 195584   ;;  %vm1680_vm8 = vcmask 228352  }
  0x6d   : > { %2060 = vmatprep.subr.bf16.mxu0 %v2366_v0  ;;  %s2375_s26 = smov 84   ;;  %s2376_s10 = smov 116  }
  0x6e   : > { %s2377_s24 = smov 80   ;;  %s2378_s20 = smov 112  }
  0x6f   : > { %s2379_s28 = smov 108   ;;  %s2380_s11 = smov 72  }
  0x70   : > { %2062 = vmatpush3.bf16.msra.mxu0 %v2061_v7  ;;  %s2381_s12 = smov 104   ;;  %s2382_s7 = smov 68  }
  0x71   : > { %1986 = vmatprep.subr.mxu0 %v2368_v1  ;;  %s2383_s8 = smov 100   ;;  %p2831_p0 = scmp.ne.s32.totalorder %s2826_s13, 0 }
  0x73   : > { %1964 = vmatmul.mubr.msk.f32.vlgmr.msra.gmra.mrb[0].mxu0 %vm247_vm1, %v242_v8 }
  0x74   : > { %1988 = vmatprep.mubr.msk.f32.mxu0 %vm2367_vm0, %v2368_v1 }
 0x146   : > { %v2619_v9 = vpop.f32.mrb[0].mxu0 }
 0x147   : > { %410 = vrot.lane.b32.xlu1 %v2619_v9, %s2369_s21  ;;  %322 = vrot.lane.b32.xlu0 %v2619_v9, %s2370_s23  ;;  %v1965_v10 = vpop.f32.mrb[1].mxu0  ;;  %s2384_s21 = smov 56   ;;  %s2385_s23 = smov 76  }
 0x14b   : > { %489 = vrot.lane.b32.xlu1 %v2619_v9, %s2371_s27  ;;  %s2386_s27 = smov 60  }
 0x14f   : > { %487 = vrot.lane.b32.xlu1 %v2619_v9, %s2372_s30  ;;  %s2387_s30 = smov 44  }
 0x153   : > { %654 = vrot.lane.b32.xlu1 %v2619_v9, %s2373_s5  ;;  %s2388_s5 = smov 52  }
 0x157   : > { %652 = vrot.lane.b32.xlu1 %v2619_v9, %s2374_s6  ;;  %s2389_s6 = smov 36  }
 0x15b   : > { %819 = vrot.lane.b32.xlu1 %v2619_v9, %s2375_s26  ;;  %s2390_s26 = smov 48  }
 0x15f   : > { %817 = vrot.lane.b32.xlu1 %v2619_v9, %s2376_s10  ;;  %s2391_s10 = smov 40  }
 0x163   : > { %984 = vrot.lane.b32.xlu1 %v2619_v9, %s2377_s24  ;;  %s2392_s24 = smov 4  }
 0x167   : > { %982 = vrot.lane.b32.xlu1 %v2619_v9, %s2378_s20  ;;  %s2393_s20 = smov 8  }
 0x16b   : > { %1147 = vrot.lane.b32.xlu1 %v2619_v9, %s2379_s28  ;;  %s2394_s28 = smov 12  }
 0x16f   : > { %1314 = vrot.lane.b32.xlu1 %v2619_v9, %s2380_s11  ;;  %s2395_s11 = smov 16  }
 0x173   : > { %1312 = vrot.lane.b32.xlu1 %v2619_v9, %s2381_s12  ;;  %s2396_s12 = smov 20  }
 0x177   : > { %1479 = vrot.lane.b32.xlu1 %v2619_v9, %s2382_s7  ;;  %s2397_s7 = smov 24  }
 0x17b   : > { %1477 = vrot.lane.b32.xlu1 %v2619_v9, %s2383_s8  ;;  %s2398_s8 = smov 28  }
 0x17f   : > { %740 = vrot.lane.b32.xlu1 %v2619_v9, %s2384_s21 }
 0x1b9   : > { %v411_v11 = vpop.permute.xlu1 %410  ;;  %v323_v12 = vpop.permute.xlu0 %322 }
 0x1ba   : > { %1967 = vmatpush3.xpose.msk.msra.mxu1 %vm324_vm2, %v323_v12 }
 0x1bb   : > { %1971 = vmatprep.subr.mxu1 %v2368_v1 }
 0x1bd   : > { %v2639_v13 = vpop.permute.xlu1 %489  ;;  %1969 = vmatmul.mubr.msk.f32.vlgmr.msra.gmra.mrb[0].mxu1 %vm324_vm2, %v2619_v9 }
 0x1be   : > { %1972 = vmatpush3.msra.mxu1 %v411_v11  ;;  %1973 = vmatprep.mubr.msk.f32.mxu1 %vm2367_vm0, %v2368_v1 }
 0x1bf   : > { %1976 = vmatprep.subr.mxu1 %v2368_v1 }
 0x1c1   : > { %v2646_v14 = vpop.permute.xlu1 %487 }
 0x1c5   : > { %v655_v15 = vpop.permute.xlu1 %654 }
 0x1c6   : > { %1987 = vmatpush3.xpose.msk.msra.mxu0 %vm324_vm2, %v655_v15 }
 0x1c7   : > { %1996 = vmatprep.subr.mxu0 %v2368_v1 }
 0x1c9   : > { %v653_v16 = vpop.permute.xlu1 %652 }
 0x1ca   : > { %1989 = vmatmul.mubr.msk.f32.vlgmr.msra.gmra.mrb[2].mxu0 %vm324_vm2, %v653_v16 }
 0x1cb   : > { %1998 = vmatprep.mubr.msk.f32.mxu0 %vm2367_vm0, %v2368_v1 }
 0x1cd   : > { %v820_v17 = vpop.permute.xlu1 %819 }
 0x1ce   : > { %1997 = vmatpush3.xpose.msk.msra.mxu0 %vm324_vm2, %v820_v17 }
 0x1cf   : > { %2006 = vmatprep.subr.mxu0 %v2368_v1 }
 0x1d1   : > { %v818_v18 = vpop.permute.xlu1 %817 }
 0x1d2   : > { %1999 = vmatmul.mubr.msk.f32.vlgmr.msra.gmra.mrb[4].mxu0 %vm324_vm2, %v818_v18 }
 0x1d3   : > { %2008 = vmatprep.mubr.msk.f32.mxu0 %vm2367_vm0, %v2368_v1 }
 0x1d5   : > { %v985_v19 = vpop.permute.xlu1 %984 }
 0x1d6   : > { %2007 = vmatpush3.xpose.msk.msra.mxu0 %vm324_vm2, %v985_v19 }
 0x1d7   : > { %2016 = vmatprep.subr.mxu0 %v2368_v1 }
 0x1d9   : > { %v983_v20 = vpop.permute.xlu1 %982 }
 0x1da   : > { %2009 = vmatmul.mubr.msk.f32.vlgmr.msra.gmra.mrb[6].mxu0 %vm324_vm2, %v983_v20 }
 0x1db   : > { %2018 = vmatprep.mubr.msk.f32.mxu0 %vm2367_vm0, %v2368_v1 }
 0x1dd   : > { %v1148_v33 = vpop.permute.xlu1 %1147 }
 0x1e1   : > { %v1315_v34 = vpop.permute.xlu1 %1314 }
 0x1e5   : > { %v1313_v37 = vpop.permute.xlu1 %1312 }
 0x1e9   : > { %v1480_v40 = vpop.permute.xlu1 %1479 }
 0x1ed   : > { %v1478_v42 = vpop.permute.xlu1 %1477 }
 0x1f1   : > { %v741_v11 = vpop.permute.xlu1 %740 }
 0x290   : > { %v395_v21 = vpop.f32.mrb[0].mxu1 }
 0x291   : > { %v1970_v22 = vpop.f32.mrb[1].mxu1  ;;  %v400_v23 = vsel %vm399_vm3, %v395_v21, -inf }
 0x292   : > { %401 = vmax.xlane.f32.xlu0 %v400_v23 }
 0x29d   : > { %v2664_v24 = vpop.f32.mrb[2].mxu0 }
 0x29e   : > { %v1990_v25 = vpop.f32.mrb[3].mxu0  ;;  %v730_v30 = vsel %vm399_vm3, %v2664_v24, -inf }
 0x2a5   : > { %v2666_v26 = vpop.f32.mrb[4].mxu0 }
 0x2a6   : > { %v2000_v27 = vpop.f32.mrb[5].mxu0  ;;  %v895_v31 = vsel %vm399_vm3, %v2666_v26, -inf }
 0x2a8   : > { %1149 = vrot.lane.b32.xlu0 %v2619_v9, %s2385_s23 }
 0x2ac   : > { %575 = vrot.lane.b32.xlu0 %v2619_v9, %s2386_s27  ;;  %s1910_s27 = sshll.u32 %s2446_s19, 7 }
 0x2ad   : > { %v2670_v28 = vpop.f32.mrb[6].mxu0 }
 0x2ae   : > { %v2010_v29 = vpop.f32.mrb[7].mxu0  ;;  %v1060_v32 = vsel %vm399_vm3, %v2670_v28, -inf }
 0x2cb   : > { %731 = vmax.xlane.f32.xlu0 %v730_v30 }
 0x2cf   : > { %896 = vmax.xlane.f32.xlu0 %v895_v31 }
 0x2d3   : > { %1061 = vmax.xlane.f32.xlu0 %v1060_v32 }
 0x31f   : > { %v402_v35 = vpop.xlane.xlu0 %401 }
 0x320   : > { %v403_v36 = vsub.f32 %v395_v21, %v402_v35 }
 0x322   : > { %v404_v38 = vmul.f32 1.442695, %v403_v36 }
 0x323   : > { %v1150_v39 = vpop.permute.xlu0 %1149 }
 0x324   : > { %2171 = vpow2.f32 %v404_v38  ;;  %2017 = vmatpush3.xpose.msk.msra.mxu0 %vm324_vm2, %v1150_v39 }
 0x325   : > { %2026 = vmatprep.subr.mxu0 %v2368_v1 }
 0x327   : > { %2019 = vmatmul.mubr.msk.f32.vlgmr.msra.gmra.mrb[8].mxu0 %vm324_vm2, %v1148_v33  ;;  %v576_v43 = vpop.permute.xlu0 %575 }
 0x328   : > { %2027 = vmatpush3.xpose.msk.msra.mxu0 %vm324_vm2, %v1315_v34  ;;  %2028 = vmatprep.mubr.msk.f32.mxu0 %vm2367_vm0, %v2368_v1 }
 0x329   : > { %2036 = vmatprep.subr.mxu0 %v2368_v1 }
 0x32b   : > { %2029 = vmatmul.mubr.msk.f32.vlgmr.msra.gmra.mrb[10].mxu0 %vm324_vm2, %v1313_v37 }
 0x32c   : > { %2037 = vmatpush3.xpose.msk.msra.mxu0 %vm324_vm2, %v1480_v40  ;;  %2038 = vmatprep.mubr.msk.f32.mxu0 %vm2367_vm0, %v2368_v1 }
 0x32d   : > { %2063 = vmatprep.subr.bf16.mxu0 %v2366_v0 }
 0x32e   : > { %v2690_v41 = vpop.eup %2171 }
 0x32f   : > { %1974 = vmatmul.mubr.msk.f32.vlgmr.msra.gmra.mrb[2].mxu1 %vm399_vm3, %v2690_v41  ;;  %2039 = vmatmul.mubr.msk.f32.vlgmr.msra.gmra.mrb[12].mxu0 %vm324_vm2, %v1478_v42 }
 0x330   : > { %1977 = vmatpush3.xpose.msk.msra.mxu1 %vm324_vm2, %v2639_v13  ;;  %1978 = vmatprep.mubr.msk.f32.mxu1 %vm2367_vm0, %v2368_v1 }
 0x331   : > { %1981 = vmatprep.subr.mxu1 %v2368_v1  ;;  %2054 = vmatprep.mubr.msk.f32.mxu0 %vm2367_vm0, %v2368_v1 }
 0x333   : > { %1979 = vmatmul.mubr.msk.f32.vlgmr.msra.gmra.mrb[4].mxu1 %vm324_vm2, %v2646_v14 }
 0x334   : > { %1982 = vmatpush3.msra.mxu1 %v576_v43  ;;  %1983 = vmatprep.mubr.msk.f32.mxu1 %vm2367_vm0, %v2368_v1 }
 0x335   : > { %1991 = vmatprep.subr.mxu1 %v2368_v1 }
 0x358   : > { %v732_v58 = vpop.xlane.xlu0 %731 }
 0x359   : > { %v733_v60 = vsub.f32 %v2664_v24, %v732_v58 }
 0x35b   : > { %v734_v61 = vmul.f32 1.442695, %v733_v60  ;;  %v1685_v60 = vld [vmem:[#allocation7 + $0x18] sm:$0xff] }
 0x35c   : > { %v897_v59 = vpop.xlane.xlu0 %896 }
 0x35d   : > { %v898_v62 = vsub.f32 %v2666_v26, %v897_v59  ;;  %2173 = vpow2.f32 %v734_v61  ;;  %v406_v26 = vsel %vm399_vm3, %v2690_v41, 0.0  ;;  %v1684_v59 = vld [vmem:[#allocation7 + $0x10] sm:$0xff] }
 0x35f   : > { %v899_v2 = vmul.f32 1.442695, %v898_v62  ;;  %v2067_v62 = vpack.c.bf16 %v1685_v60, %v1684_v59 }
 0x360   : > { %v1062_v63 = vpop.xlane.xlu0 %1061 }
 0x361   : > { %v1063_v3 = vsub.f32 %v2670_v28, %v1062_v63  ;;  %2175 = vpow2.f32 %v899_v2 }
 0x363   : > { %v1064_v4 = vmul.f32 1.442695, %v1063_v3 }
 0x365   : > { %2177 = vpow2.f32 %v1064_v4 }
 0x367   : > { %v2174_v5 = vpop.eup %2173 }
 0x368   : > { %v736_v6 = vsel %vm399_vm3, %v2174_v5, 0.0 }
 0x36b   : > { %v2176_v7 = vpop.eup %2175 }
 0x36c   : > { %v901_v8 = vsel %vm399_vm3, %v2176_v7, 0.0 }
 0x3fa   : > { %v1221_v44 = vpop.f32.mrb[8].mxu0 }
 0x3fb   : > { %v2020_v45 = vpop.f32.mrb[9].mxu0  ;;  %v1225_v46 = vsel %vm399_vm3, %v1221_v44, -inf }
 0x3fc   : > { %1226 = vmax.xlane.f32.xlu1 %v1225_v46 }
 0x3fe   : > { %v1386_v47 = vpop.f32.mrb[10].mxu0 }
 0x3ff   : > { %v2030_v48 = vpop.f32.mrb[11].mxu0  ;;  %v1390_v49 = vsel %vm399_vm3, %v1386_v47, -inf }
 0x400   : > { %1391 = vmax.xlane.f32.xlu0 %v1390_v49 }
 0x402   : > { %v2709_v50 = vpop.f32.mrb[2].mxu1  ;;  %v1551_v51 = vpop.f32.mrb[12].mxu0 }
 0x403   : > { %v1975_v52 = vpop.f32.mrb[3].mxu1  ;;  %v2040_v53 = vpop.f32.mrb[13].mxu0  ;;  %v1555_v54 = vsel %vm399_vm3, %v1551_v51, -inf }
 0x404   : > { %1556 = vmax.xlane.f32.xlu1 %v1555_v54  ;;  %v1683_v52 = vld [vmem:[#allocation7 + $0x8] sm:$0xff] }
 0x406   : > { %v561_v55 = vpop.f32.mrb[4].mxu1 }
 0x407   : > { %v1980_v56 = vpop.f32.mrb[5].mxu1  ;;  %v565_v57 = vsel %vm399_vm3, %v561_v55, -inf }
 0x408   : > { %566 = vmax.xlane.f32.xlu1 %v565_v57 }
 0x416   : > { %1235 = vrot.lane.b32.xlu0 %v2619_v9, %s2387_s30  ;;  %s241_s30 = scalar_lea.vmem [#allocation8], %s1878_s25  ;;  %s2399_s25 = smov [#allocation8]  }
 0x419   : > { %905 = vrot.lane.b32.xlu1 %v2619_v9, %s2388_s5  ;;  %s1781_s5 = sshll.u32 %s241_s30, 4  ;;  %s2770_s5 = int_to_ptr.vmem [resolvable:$true] %s1781_s5 }
 0x41a   : > { %1565 = vrot.lane.b32.xlu0 %v2619_v9, %s2389_s6  ;;  %s2289_s19 = scalar_lea.vmem %s2770_s5, 128 }
 0x41b   : > { %p2290_p11 = scmp.ne.s32.totalorder %s2770_s5, %s2289_s19 }
 0x41d   : > { %1070 = vrot.lane.b32.xlu1 %v2619_v9, %s2390_s26  ;;  %p2291_p1 = pnand %p2290_p11, %p2831_p0 }
 0x41f   : > { %p2292_p3 = pneg %p2291_p1 }
 0x421   : > { %1400 = vrot.lane.b32.xlu1 %v2619_v9, %s2391_s10  ;;  %v2178_v9 = vpop.eup %2177  ;;  %s2768_s10 = scalar_lea.hbm %s2817_s4, %s1910_s27 }
 0x422   : > { %v1066_v10 = vsel %vm399_vm3, %v2178_v9, 0.0 }
 0x439   : > { %737 = vadd.xlane.f32.xlu0 %v736_v6 }
 0x43d   : > { %902 = vadd.xlane.f32.xlu0 %v901_v8 }
 0x441   : > { %1067 = vadd.xlane.f32.xlu0 %v1066_v10 }
 0x489   : > { %v1227_v12 = vpop.xlane.xlu1 %1226 }
 0x48a   : > { %v1228_v17 = vsub.f32 %v1221_v44, %v1227_v12 }
 0x48c   : > { %v1229_v20 = vmul.f32 1.442695, %v1228_v17 }
 0x48d   : > { %v1392_v13 = vpop.xlane.xlu0 %1391 }
 0x48e   : > { %v1393_v14 = vsub.f32 %v1386_v47, %v1392_v13 }
 0x490   : > { %v1394_v15 = vmul.f32 1.442695, %v1393_v14 }
 0x491   : > { %v1557_v16 = vpop.xlane.xlu1 %1556  ;;  %v1236_v35 = vpop.permute.xlu0 %1235 }
 0x492   : > { %2179 = vpow2.f32 %v1394_v15  ;;  %v1558_v21 = vsub.f32 %v1551_v51, %v1557_v16  ;;  %v1682_v51 = vld [vmem:[#allocation7] sm:$0xff] }
 0x493   : > { %v2064_v54 = vpack.c.bf16 %v1683_v52, %v1682_v51 }
 0x494   : > { %v1559_v24 = vmul.f32 1.442695, %v1558_v21 }
 0x495   : > { %v567_v18 = vpop.xlane.xlu1 %566  ;;  %v1566_v37 = vpop.permute.xlu0 %1565  ;;  %2065 = vmatpush3.bf16.msra.mxu0 %v2064_v54 }
 0x496   : > { %v568_v19 = vsub.f32 %v561_v55, %v567_v18  ;;  %2066 = vmatprep.subr.bf16.mxu0 %v2366_v0 }
 0x498   : > { %v569_v22 = vmul.f32 1.442695, %v568_v19 }
 0x499   : > { %v906_v30 = vpop.permute.xlu1 %905  ;;  %2068 = vmatpush3.bf16.msra.mxu0 %v2067_v62 }
 0x49a   : > { %2181 = vpow2.f32 %v569_v22 }
 0x49b   : > { %2183 = vpow2.f32 %v1229_v20 }
 0x49c   : > { %v2180_v23 = vpop.eup %2179  ;;  %2185 = vpow2.f32 %v1559_v24 }
 0x49d   : > { %v1396_v25 = vsel %vm399_vm3, %v2180_v23, 0.0  ;;  %v1071_v33 = vpop.permute.xlu1 %1070 }
 0x49e   : > { %1397 = vadd.xlane.f32.xlu0 %v1396_v25 }
 0x4a1   : > { %v1401_v36 = vpop.permute.xlu1 %1400 }
 0x4a2   : > { %407 = vadd.xlane.f32.xlu0 %v406_v26 }
 0x4a4   : > { %v2182_v27 = vpop.eup %2181 }
 0x4a5   : > { %1984 = vmatmul.mubr.msk.f32.vlgmr.msra.gmra.mrb[6].mxu1 %vm399_vm3, %v2182_v27  ;;  %v571_v28 = vsel %vm399_vm3, %v2182_v27, 0.0  ;;  %v2184_v29 = vpop.eup %2183 }
 0x4a6   : > { %1992 = vmatpush3.msra.mxu1 %v741_v11  ;;  %572 = vadd.xlane.f32.xlu1 %v571_v28  ;;  %v1231_v31 = vsel %vm399_vm3, %v2184_v29, 0.0  ;;  %v2186_v32 = vpop.eup %2185 }
 0x4a7   : > { %1993 = vmatprep.mubr.msk.f32.mxu1 %vm2367_vm0, %v2368_v1  ;;  %2001 = vmatprep.subr.mxu1 %v2368_v1  ;;  %v1561_v34 = vsel %vm399_vm3, %v2186_v32, 0.0 }
 0x4a9   : > { %1994 = vmatmul.mubr.msk.f32.vlgmr.msra.gmra.mrb[8].mxu1 %vm399_vm3, %v2174_v5 }
 0x4aa   : > { %2002 = vmatpush3.msra.mxu1 %v906_v30  ;;  %1232 = vadd.xlane.f32.xlu1 %v1231_v31 }
 0x4ab   : > { %2003 = vmatprep.mubr.msk.f32.mxu1 %vm2367_vm0, %v2368_v1  ;;  %2011 = vmatprep.subr.mxu1 %v2368_v1 }
 0x4ad   : > { %2004 = vmatmul.mubr.msk.f32.vlgmr.msra.gmra.mrb[10].mxu1 %vm399_vm3, %v2176_v7 }
 0x4ae   : > { %2012 = vmatpush3.msra.mxu1 %v1071_v33  ;;  %1562 = vadd.xlane.f32.xlu1 %v1561_v34 }
 0x4af   : > { %2013 = vmatprep.mubr.msk.f32.mxu1 %vm2367_vm0, %v2368_v1  ;;  %2021 = vmatprep.subr.mxu1 %v2368_v1 }
 0x4b1   : > { %2014 = vmatmul.mubr.msk.f32.vlgmr.msra.gmra.mrb[12].mxu1 %vm399_vm3, %v2178_v9 }
 0x4b2   : > { %2022 = vmatpush3.msra.mxu1 %v1236_v35  ;;  %2023 = vmatprep.mubr.msk.f32.mxu1 %vm2367_vm0, %v2368_v1 }
 0x4b3   : > { %2031 = vmatprep.subr.mxu1 %v2368_v1 }
 0x4b5   : > { %2024 = vmatmul.mubr.msk.f32.vlgmr.msra.gmra.mrb[14].mxu1 %vm399_vm3, %v2184_v29 }
 0x4b6   : > { %2032 = vmatpush3.msra.mxu1 %v1401_v36  ;;  %2033 = vmatprep.mubr.msk.f32.mxu1 %vm2367_vm0, %v2368_v1 }
 0x4b7   : > { %2041 = vmatprep.subr.mxu1 %v2368_v1 }
 0x4b9   : > { %2034 = vmatmul.mubr.msk.f32.vlgmr.msra.gmra.mrb[16].mxu1 %vm399_vm3, %v2180_v23 }
 0x4ba   : > { %2042 = vmatpush3.msra.mxu1 %v1566_v37  ;;  %2043 = vmatprep.mubr.msk.f32.mxu1 %vm2367_vm0, %v2368_v1 }
 0x4bd   : > { %2044 = vmatmul.mubr.msk.f32.vlgmr.msra.gmra.mrb[18].mxu1 %vm399_vm3, %v2186_v32  ;;  %v1907_v32 = vld [vmem:[%s2816_s3] ss:$0 sm:$0xff] }
 0x4c6   : > { %v738_v38 = vpop.xlane.xlu0 %737 }
 0x4ca   : > { %v903_v40 = vpop.xlane.xlu0 %902 }
 0x4ce   : > { %v1068_v41 = vpop.xlane.xlu0 %1067 }
 0x52b   : > { %v1398_v53 = vpop.xlane.xlu0 %1397 }
 0x52f   : > { %v408_v16 = vpop.xlane.xlu0 %407 }
 0x533   : > { %v573_v39 = vpop.xlane.xlu1 %572 }
 0x534   : > { %2187 = vrcp.f32 %v573_v39 }
 0x535   : > { %2189 = vrcp.f32 %v738_v38 }
 0x536   : > { %2191 = vrcp.f32 %v903_v40 }
 0x537   : > { %2193 = vrcp.f32 %v1068_v41  ;;  %v1233_v46 = vpop.xlane.xlu1 %1232 }
 0x538   : > { %2195 = vrcp.f32 %v1233_v46 }
 0x539   : > { %2197 = vrcp.f32 %v1398_v53 }
 0x53b   : > { %v1563_v61 = vpop.xlane.xlu1 %1562 }
 0x53c   : > { %2199 = vrcp.f32 %v1563_v61 }
 0x53d   : > { %2201 = vrcp.f32 %v408_v16 }
 0x53e   : > { %v2188_v42 = vpop.eup %2187 }
 0x53f   : > { %v2190_v47 = vpop.eup %2189 }
 0x540   : > { %v2192_v55 = vpop.eup %2191 }
 0x541   : > { %v2194_v63 = vpop.eup %2193 }
 0x542   : > { %v2196_v5 = vpop.eup %2195 }
 0x543   : > { %v2198_v0 = vpop.eup %2197 }
 0x546   : > { %v2200_v12 = vpop.eup %2199 }
 0x547   : > { %v2202_v19 = vpop.eup %2201 }
 0x548   : > { %v486_v21 = vmul.f32 %v2202_v19, %v2709_v50 }
 0x578   : > { %v647_v43 = vpop.f32.mrb[6].mxu1 }
 0x579   : > { %v651_v44 = vmul.f32 %v2188_v42, %v647_v43  ;;  %v1985_v45 = vpop.f32.mrb[7].mxu1 }
 0x57b   : > { %1643 = vrot.lane.b32.xlu1 %v651_v44, %s2392_s24  ;;  %s1768_s24 = scalar_lea.sflag [#allocation4], %s2594_s29 }
 0x57c   : > { %v812_v48 = vpop.f32.mrb[8].mxu1 }
 0x57d   : > { %v816_v1 = vmul.f32 %v2190_v47, %v812_v48  ;;  %v1995_v49 = vpop.f32.mrb[9].mxu1 }
 0x57f   : > { %1647 = vrot.lane.b32.xlu0 %v816_v1, %s2393_s20  ;;  %s2293_s20 = sshll.u32 %s2399_s25, 4  ;;  %s2294_s20 = int_to_ptr.vmem [resolvable:$false] %s2293_s20 }
 0x580   : > { %v977_v56 = vpop.f32.mrb[10].mxu1  ;;  %p2296_p7 = scmp.lt.s32.totalorder %s2770_s5, %s2294_s20 }
 0x581   : > { %v981_v57 = vmul.f32 %v2192_v55, %v977_v56  ;;  %v2005_v58 = vpop.f32.mrb[11].mxu1 }
 0x583   : > { %1651 = vrot.lane.b32.xlu1 %v981_v57, %s2394_s28  ;;  %s2295_s28 = scalar_lea.vmem %s2294_s20, 256 }
 0x584   : > { %v1142_v2 = vpop.f32.mrb[12].mxu1  ;;  %p2297_p9 = scmp.lt.s32.totalorder %s2295_s28, %s2289_s19 }
 0x585   : > { %v1146_v3 = vmul.f32 %v2194_v63, %v1142_v2  ;;  %v2015_v4 = vpop.f32.mrb[13].mxu1 }
 0x586   : > { %p2298_p12 = por %p2297_p9, %p2296_p7 }
 0x587   : > { %1655 = vrot.lane.b32.xlu1 %v1146_v3, %s2395_s11 }
 0x588   : > { %v1307_v6 = vpop.f32.mrb[14].mxu1  ;;  %p2299_p2 = pnand %p2298_p12, %p2292_p3 }
 0x589   : > { %v1311_v7 = vmul.f32 %v2196_v5, %v1307_v6  ;;  %v2025_v8 = vpop.f32.mrb[15].mxu1 }
 0x58b   : > { %1659 = vrot.lane.b32.xlu1 %v1311_v7, %s2396_s12 }
 0x58c   : > { %v1472_v9 = vpop.f32.mrb[16].mxu1 }
 0x58d   : > { %v1476_v10 = vmul.f32 %v2198_v0, %v1472_v9  ;;  %v2035_v11 = vpop.f32.mrb[17].mxu1 }
 0x58f   : > { %1663 = vrot.lane.b32.xlu0 %v1476_v10, %s2397_s7 }
 0x590   : > { %v1637_v13 = vpop.f32.mrb[18].mxu1 }
 0x591   : > { %v1641_v14 = vmul.f32 %v2200_v12, %v1637_v13  ;;  %v2045_v15 = vpop.f32.mrb[19].mxu1 }
 0x593   : > { %1667 = vrot.lane.b32.xlu1 %v1641_v14, %s2398_s8 }
 0x5ed   : > { %v1644_v17 = vpop.permute.xlu1 %1643 }
 0x5ee   : > { %v1670_v23 = vsel %vm324_vm2, %v486_v21, %v1644_v17 }
 0x5f1   : > { %v1648_v22 = vpop.permute.xlu0 %1647 }
 0x5f2   : > { %v1671_v24 = vsel %vm399_vm3, %v1670_v23, %v1648_v22 }
 0x5f5   : > { %v1652_v18 = vpop.permute.xlu1 %1651 }
 0x5f6   : > { %v1673_v26 = vsel %vm1672_vm4, %v1671_v24, %v1652_v18 }
 0x5f9   : > { %v1656_v20 = vpop.permute.xlu1 %1655 }
 0x5fa   : > { %v1675_v28 = vsel %vm1674_vm5, %v1673_v26, %v1656_v20 }
 0x5fd   : > { %v1660_v25 = vpop.permute.xlu1 %1659 }
 0x5fe   : > { %v1677_v29 = vsel %vm1676_vm6, %v1675_v28, %v1660_v25 }
 0x601   : > { %v1664_v27 = vpop.permute.xlu0 %1663 }
 0x602   : > { %v1679_v30 = vsel %vm1678_vm7, %v1677_v29, %v1664_v27 }
 0x605   : > { %v1668_v50 = vpop.permute.xlu1 %1667 }
 0x606   : > { %v1681_v31 = vsel %vm1680_vm8, %v1679_v30, %v1668_v50 }
 0x607   : > { %2055 = vmatmul.mubr.msk.f32.vlgmr.msra.gmra.mrb[14].mxu0 %vm247_vm1, %v1681_v31 }
 0x6da   : > { %v1762_v33 = vpop.f32.mrb[14].mxu0 }
 0x6db   : > { %v1763_v34 = vadd.f32 %v1907_v32, %v1762_v33  ;;  %v2056_v35 = vpop.f32.mrb[15].mxu0 }
 0x6dd   : > { %1766 = vst.msk [vmem:[%s241_s30] sm:$0xff] %vm247_vm1, %v1763_v34 }
 0x6de   : > { %2302 = shalt.err (!%p2299_p2)
}
 0x6df   : > { %s2303_s29 = scalar_lea.hbm %s2768_s10, 128  ;;  %s2307_s7 = scalar_lea.hbm %s2817_s4, 256 }
 0x6e0   : > { %p2304_p13 = scmp.ne.s32.totalorder %s2768_s10, %s2303_s29  ;;  %p2308_p4 = scmp.lt.u32.totalorder %s2768_s10, %s2817_s4 }
 0x6e1   : > { %p2309_p5 = scmp.lt.u32.totalorder %s2307_s7, %s2303_s29  ;;  %p2311_p11 = scmp.lt.u32.totalorder %s2303_s29, %s2768_s10 }
 0x6e2   : > { %p2305_p6 = pnand %p2304_p13, %p2831_p0 }
 0x6e3   : > { %p2310_p8 = por %p2309_p5, %p2308_p4 }
 0x6e4   : > { %p2306_p10 = pneg %p2305_p6 }
 0x6e5   : > { %p2312_p1 = por %p2311_p11, %p2310_p8 }
 0x6e7   : > { %p2313_p3 = pnand %p2312_p1, %p2306_p10 }
 0x6e9   : > { %2316 = shalt.err (!%p2313_p3)
}
 0x6ea   : > { %2079 = dma.vmem_to_hbm [thread:$0]  (%p2831_p0), %s2770_s5, 128, %s2768_s10, %s1768_s24  }
 0x6eb PF: > { %s1793_s23 = sand.u32 1, %s2347_s15   ;;  %p2832_p7 = scmp.ne.s32.totalorder %s2822_s22, 0 }
 0x6ec   : > { %p2833_p9 = scmp.ge.s32.totalorder %s2359_s18, 2  ;;  %s1794_s27 = scalar_lea.sflag [#allocation4], %s1793_s23 }
 0x6ee   : > { %p2093_p12 = pnand %p2833_p9, %p2832_p7 }
 0x6f0   : > { %2342 = dma.done.wait (!%p2093_p12), %s1794_s27, 128  }
 0x6f1   : > { %2344 = vsyncadd (!%p2093_p12), %s1794_s27, 4294967168  ;;  %p18_p2 = scmp.ge.s32.totalorder %s2535_s9, 4   ;;  %s2834_s15 = smov %s2351_s16 }
 0x6f2   : > { %s2835_s16 = smov %s2355_s17  ;;  %s2836_s17 = smov %s2551_s14 }
 0x6f3   : > { %s2837_s18 = smov %s2535_s9  ;;  %20 = sbr.rel (!%p18_p2) target bundleno = 6 (0x6), region = 89 }
 0x6fa   :  { %1799 = vsyncpa [#allocation3], 1 }
 0x6fb   :  { %1801 = vsyncpa [#allocation3 + $0x1], 1 }
 0x6fc   :  { %1802 = vsyncpa [#allocation6], 1 }
 0x6fd   :  { %1803 = vsyncpa [#allocation4], 1 }
 0x6fe   :  { %1805 = vsyncpa [#allocation4 + $0x1], 1 }

</bundles_post_ra>
